<compile_context>
chip_gen: v6e
topology: v6e:2x2x1
jax: 0.10.0
libtpu: 0.0.40
codegen_flags: <defaults>
</compile_context>

<pallas_src>
import functools

import jax
import jax.numpy as jnp
from jax.experimental import pallas as pl
from jax.experimental.pallas import tpu as pltpu

EPS = 1e-5


# --------------------------------------------------------------------------
# Kernels
# --------------------------------------------------------------------------
def _fc_relu_stats_kernel(x_ref, w_ref, b_ref, h_ref, s_ref, ss_ref):
    """h = relu(x @ w + b); accumulate per-feature sum / sumsq over batch tiles."""
    i = pl.program_id(0)
    h = jnp.dot(x_ref[...], w_ref[...], preferred_element_type=jnp.float32)
    h = jnp.maximum(h + b_ref[...], 0.0)

    @pl.when(i == 0)
    def _():
        s_ref[...] = jnp.zeros_like(s_ref)
        ss_ref[...] = jnp.zeros_like(ss_ref)

    s_ref[...] += jnp.sum(h, axis=0, keepdims=True)
    ss_ref[...] += jnp.sum(h * h, axis=0, keepdims=True)
    h_ref[...] = h


def _bn_fc_relu_stats_kernel(h_in_ref, s_in_ref, ss_in_ref, w_ref, b_ref,
                             h_ref, s_ref, ss_ref, *, inv_b):
    """BatchNorm(prev layer, full-batch stats) -> fc -> relu -> accumulate stats."""
    i = pl.program_id(0)
    mean = s_in_ref[...] * inv_b
    var = ss_in_ref[...] * inv_b - mean * mean       # biased batch variance
    hn = (h_in_ref[...] - mean) * jax.lax.rsqrt(var + EPS)

    h = jnp.dot(hn.astype(jnp.bfloat16), w_ref[...],
                preferred_element_type=jnp.float32)
    h = jnp.maximum(h + b_ref[...], 0.0)

    @pl.when(i == 0)
    def _():
        s_ref[...] = jnp.zeros_like(s_ref)
        ss_ref[...] = jnp.zeros_like(ss_ref)

    s_ref[...] += jnp.sum(h, axis=0, keepdims=True)
    ss_ref[...] += jnp.sum(h * h, axis=0, keepdims=True)
    h_ref[...] = h


def _bn_fc_logsoftmax_kernel(h_ref, s_ref, ss_ref, w_ref, b_ref, o_ref,
                             *, inv_b, out_dim):
    """BatchNorm(prev layer) -> fc3 (lane-padded) -> log_softmax over real columns."""
    mean = s_ref[...] * inv_b
    var = ss_ref[...] * inv_b - mean * mean
    hn = (h_ref[...] - mean) * jax.lax.rsqrt(var + EPS)

    logits = jnp.dot(hn.astype(jnp.bfloat16), w_ref[...],
                     preferred_element_type=jnp.float32) + b_ref[...]
    col = jax.lax.broadcasted_iota(jnp.int32, logits.shape, 1)
    valid = col < out_dim
    logits = jnp.where(valid, logits, -jnp.inf)

    m = jnp.max(logits, axis=-1, keepdims=True)
    shifted = logits - m
    lse = jnp.log(jnp.sum(jnp.exp(shifted), axis=-1, keepdims=True))
    o_ref[...] = jnp.where(valid, shifted - lse, 0.0)


# --------------------------------------------------------------------------
# Wrapper
# --------------------------------------------------------------------------
def fully_connected_nn_forward(x, params, *, tile_b=512):
    """x: (B, ...) f32 (flattened to (B, 784)). params: w's stored (in, out), b's (1, out)."""
    B = x.shape[0]
    x = x.reshape(B, -1)
    w1, b1 = params["w1"], params["b1"]
    w2, b2 = params["w2"], params["b2"]
    w3, b3 = params["w3"], params["b3"]
    in_dim, h1_dim = w1.shape
    h2_dim = w2.shape[1]
    out_dim = w3.shape[1]
    assert x.shape[1] == in_dim

    tile_b = min(tile_b, B)
    assert B % tile_b == 0, "batch size must be divisible by the batch tile"
    n_tiles = B // tile_b

    # bf16 operands for the MXU (f32 accumulation); biases stay f32.
    xb = x.astype(jnp.bfloat16)
    w1b = w1.astype(jnp.bfloat16)
    w2b = w2.astype(jnp.bfloat16)
    # Lane-dense final layer: pad 10 -> 128 output columns with zeros.
    out_pad = pl.cdiv(out_dim, 128) * 128
    w3p = jnp.zeros((h2_dim, out_pad), jnp.bfloat16).at[:, :out_dim].set(
        w3.astype(jnp.bfloat16))
    b3p = jnp.zeros((1, out_pad), jnp.float32).at[:, :out_dim].set(b3)

    inv_b = 1.0 / B
    vmem_limit = 32 * 1024 * 1024  # sized against v7x (64 MiB physical) with headroom
    cp_seq = pltpu.CompilerParams(dimension_semantics=("arbitrary",),
                                  vmem_limit_bytes=vmem_limit)
    cp_par = pltpu.CompilerParams(dimension_semantics=("parallel",),
                                  vmem_limit_bytes=vmem_limit)

    def full(r, c):
        return pl.BlockSpec((r, c), lambda i: (0, 0))

    def tiled(c):
        return pl.BlockSpec((tile_b, c), lambda i: (i, 0))

    # ---- layer 1: fc1 + relu, accumulate BN1 full-batch statistics ----------
    h1, s1, ss1 = pl.pallas_call(
        _fc_relu_stats_kernel,
        grid=(n_tiles,),
        in_specs=[tiled(in_dim), full(in_dim, h1_dim), full(1, h1_dim)],
        out_specs=[tiled(h1_dim), full(1, h1_dim), full(1, h1_dim)],
        out_shape=[jax.ShapeDtypeStruct((B, h1_dim), jnp.float32),
                   jax.ShapeDtypeStruct((1, h1_dim), jnp.float32),
                   jax.ShapeDtypeStruct((1, h1_dim), jnp.float32)],
        compiler_params=cp_seq,
        cost_estimate=pl.CostEstimate(
            flops=2 * B * in_dim * h1_dim,
            transcendentals=0,
            bytes_accessed=B * in_dim * 2 + in_dim * h1_dim * 2
            + h1_dim * 4 + B * h1_dim * 4 + 2 * h1_dim * 4),
    )(xb, w1b, b1)

    # ---- layer 2: BN1 + fc2 + relu, accumulate BN2 statistics ---------------
    h2, s2, ss2 = pl.pallas_call(
        functools.partial(_bn_fc_relu_stats_kernel, inv_b=inv_b),
        grid=(n_tiles,),
        in_specs=[tiled(h1_dim), full(1, h1_dim), full(1, h1_dim),
                  full(h1_dim, h2_dim), full(1, h2_dim)],
        out_specs=[tiled(h2_dim), full(1, h2_dim), full(1, h2_dim)],
        out_shape=[jax.ShapeDtypeStruct((B, h2_dim), jnp.float32),
                   jax.ShapeDtypeStruct((1, h2_dim), jnp.float32),
                   jax.ShapeDtypeStruct((1, h2_dim), jnp.float32)],
        compiler_params=cp_seq,
        cost_estimate=pl.CostEstimate(
            flops=2 * B * h1_dim * h2_dim,
            transcendentals=h1_dim,
            bytes_accessed=B * h1_dim * 4 + h1_dim * h2_dim * 2
            + h2_dim * 4 + B * h2_dim * 4 + 2 * h2_dim * 4),
    )(h1, s1, ss1, w2b, b2)

    # ---- layer 3: BN2 + fc3 + log_softmax (lane-dense padded output) --------
    out_padded = pl.pallas_call(
        functools.partial(_bn_fc_logsoftmax_kernel, inv_b=inv_b, out_dim=out_dim),
        grid=(n_tiles,),
        in_specs=[tiled(h2_dim), full(1, h2_dim), full(1, h2_dim),
                  full(h2_dim, out_pad), full(1, out_pad)],
        out_specs=tiled(out_pad),
        out_shape=jax.ShapeDtypeStruct((B, out_pad), jnp.float32),
        compiler_params=cp_par,
        cost_estimate=pl.CostEstimate(
            flops=2 * B * h2_dim * out_pad,
            transcendentals=B * (out_pad + 2) + h2_dim,
            bytes_accessed=B * h2_dim * 4 + h2_dim * out_pad * 2
            + out_pad * 4 + B * out_pad * 4),
    )(h2, s2, ss2, w3p, b3p)

    return out_padded[:, :out_dim]


# --------------------------------------------------------------------------
# Init (matches the PyTorch module: Xavier-normal weights, default Linear bias)
# --------------------------------------------------------------------------
def init_params(key, input_dim=784, hidden_one=300, hidden_two=100, output_dim=10):
    ks = jax.random.split(key, 6)

    def xavier(k, fan_in, fan_out):
        std = jnp.sqrt(2.0 / (fan_in + fan_out))
        return jax.random.normal(k, (fan_in, fan_out), jnp.float32) * std

    def bias(k, fan_in, fan_out):
        bound = 1.0 / jnp.sqrt(fan_in)
        return jax.random.uniform(k, (1, fan_out), jnp.float32,
                                  minval=-bound, maxval=bound)

    return {
        "w1": xavier(ks[0], input_dim, hidden_one),
        "b1": bias(ks[1], input_dim, hidden_one),
        "w2": xavier(ks[2], hidden_one, hidden_two),
        "b2": bias(ks[3], hidden_one, hidden_two),
        "w3": xavier(ks[4], hidden_two, output_dim),
        "b3": bias(ks[5], hidden_two, output_dim),
    }


def _reference_forward(x, params):
    """Plain-JAX reference mirroring the PyTorch forward (training-mode BatchNorm,
    affine=False, biased variance) at the same matmul precision as the kernel
    (bf16 operands, f32 accumulation)."""
    x = x.reshape(x.shape[0], -1)

    def bn(h):
        mean = jnp.mean(h, axis=0, keepdims=True)
        var = jnp.mean((h - mean) ** 2, axis=0, keepdims=True)
        return (h - mean) / jnp.sqrt(var + EPS)

    def mm(a, w):
        return jnp.dot(a.astype(jnp.bfloat16), w.astype(jnp.bfloat16),
                       preferred_element_type=jnp.float32)

    h1 = bn(jnp.maximum(mm(x, params["w1"]) + params["b1"], 0.0))
    h2 = bn(jnp.maximum(mm(h1, params["w2"]) + params["b2"], 0.0))
    logits = mm(h2, params["w3"]) + params["b3"]
    return jax.nn.log_softmax(logits, axis=-1)


if __name__ == "__main__":
    key = jax.random.PRNGKey(0)
    k_x, k_p = jax.random.split(key)

    B, INPUT_DIM, H1, H2, OUT = 256, 784, 300, 100, 10
    # The PyTorch module flattens (B, 1, 28, 28) -> (B, 784); the wrapper does too.
    x = jax.random.normal(k_x, (B, 1, 28, 28), jnp.float32)
    params = init_params(k_p, INPUT_DIM, H1, H2, OUT)

    out = fully_connected_nn_forward(x, params, tile_b=128)
    out = jax.block_until_ready(out)

    ref = _reference_forward(x, params)
    assert out.shape == (B, OUT)
    assert bool(jnp.all(jnp.isfinite(out)))
    assert jnp.allclose(out, ref, atol=5e-3, rtol=5e-3), float(
        jnp.max(jnp.abs(out - ref)))
    # log_softmax rows should (approximately) sum to 1 in probability space.
    assert jnp.allclose(jnp.sum(jnp.exp(out), axis=-1), 1.0, atol=1e-3)

    print("KERNEL_OK")
</pallas_src>

<mosaic_0001>
module attributes {stable_mosaic.version = 11 : i64} {
  func.func @_fc_relu_stats_kernel(%arg0: i32, %arg1: memref<128x784xbf16, #tpu.memory_space<vmem>>, %arg2: memref<784x300xbf16, #tpu.memory_space<vmem>>, %arg3: memref<1x300xf32, #tpu.memory_space<vmem>>, %arg4: memref<128x300xf32, #tpu.memory_space<vmem>>, %arg5: memref<1x300xf32, #tpu.memory_space<vmem>>, %arg6: memref<1x300xf32, #tpu.memory_space<vmem>>) attributes {dimension_semantics = [#tpu.dimension_semantics<arbitrary>], iteration_bounds = array<i64: 2>, scalar_prefetch = 0 : i64, scratch_operands = 0 : i64, tpu.core_type = #tpu.core_type<tc>, window_params = [{transform_indices = @transform_0, window_bounds = array<i64: 128, 784>}, {pipeline_mode = #tpu.pipeline_mode<synchronous>, transform_indices = @transform_1, window_bounds = array<i64: 784, 300>}, {pipeline_mode = #tpu.pipeline_mode<synchronous>, transform_indices = @transform_2, window_bounds = array<i64: 1, 300>}, {transform_indices = @transform_3, window_bounds = array<i64: 128, 300>}, {pipeline_mode = #tpu.pipeline_mode<synchronous>, transform_indices = @transform_4, window_bounds = array<i64: 1, 300>}, {pipeline_mode = #tpu.pipeline_mode<synchronous>, transform_indices = @transform_5, window_bounds = array<i64: 1, 300>}]} {
    %c0 = arith.constant 0 : index
    %c0_0 = arith.constant 0 : index
    %0 = vector.load %arg1[%c0, %c0_0] : memref<128x784xbf16, #tpu.memory_space<vmem>>, vector<128x784xbf16>
    %c0_1 = arith.constant 0 : index
    %c0_2 = arith.constant 0 : index
    %1 = vector.load %arg2[%c0_1, %c0_2] : memref<784x300xbf16, #tpu.memory_space<vmem>>, vector<784x300xbf16>
    %cst = arith.constant dense<0.000000e+00> : vector<128x300xf32>
    %2 = tpu.matmul %0, %1, %cst {dimension_numbers = #tpu.dot_dimension_numbers<[1], [0], [0], [1], [0, 0, 1, 1], [], []>} : vector<128x784xbf16>, vector<784x300xbf16>, vector<128x300xf32> -> vector<128x300xf32>
    %c0_3 = arith.constant 0 : index
    %c0_4 = arith.constant 0 : index
    %3 = vector.load %arg3[%c0_3, %c0_4] : memref<1x300xf32, #tpu.memory_space<vmem>>, vector<1x300xf32>
    %4 = vector.broadcast %3 : vector<1x300xf32> to vector<128x300xf32>
    %5 = arith.addf %2, %4 : vector<128x300xf32>
    %cst_5 = arith.constant 0.000000e+00 : f32
    %6 = vector.broadcast %cst_5 : f32 to vector<128x300xf32>
    %7 = arith.maximumf %5, %6 : vector<128x300xf32>
    %c0_i32 = arith.constant 0 : i32
    %8 = arith.cmpi eq, %arg0, %c0_i32 : i32
    %9 = arith.extui %8 : i1 to i32
    %c0_i32_6 = arith.constant 0 : i32
    %10 = arith.cmpi ne, %9, %c0_i32_6 : i32
    scf.if %10 {
      %cst_19 = arith.constant 0.000000e+00 : f32
      %23 = vector.broadcast %cst_19 : f32 to vector<1x300xf32>
      %c0_20 = arith.constant 0 : index
      %c0_21 = arith.constant 0 : index
      %24 = vector.load %arg5[%c0_20, %c0_21] : memref<1x300xf32, #tpu.memory_space<vmem>>, vector<1x300xf32>
      tpu.vector_store %arg5[%c0_20, %c0_21], %23 {strides = array<i32>} : memref<1x300xf32, #tpu.memory_space<vmem>>, vector<1x300xf32>,
      %cst_22 = arith.constant 0.000000e+00 : f32
      %25 = vector.broadcast %cst_22 : f32 to vector<1x300xf32>
      %c0_23 = arith.constant 0 : index
      %c0_24 = arith.constant 0 : index
      %26 = vector.load %arg6[%c0_23, %c0_24] : memref<1x300xf32, #tpu.memory_space<vmem>>, vector<1x300xf32>
      tpu.vector_store %arg6[%c0_23, %c0_24], %25 {strides = array<i32>} : memref<1x300xf32, #tpu.memory_space<vmem>>, vector<1x300xf32>,
    } else {
    }
    %c0_7 = arith.constant 0 : index
    %c0_8 = arith.constant 0 : index
    %11 = vector.load %arg5[%c0_7, %c0_8] : memref<1x300xf32, #tpu.memory_space<vmem>>, vector<1x300xf32>
    %cst_9 = arith.constant dense<0.000000e+00> : vector<300xf32>
    %12 = vector.multi_reduction <add>, %7, %cst_9 [0] : vector<128x300xf32> to vector<300xf32>
    %13 = vector.shape_cast %12 : vector<300xf32> to vector<1x300xf32>
    %14 = arith.addf %11, %13 : vector<1x300xf32>
    %c0_10 = arith.constant 0 : index
    %c0_11 = arith.constant 0 : index
    %15 = vector.load %arg5[%c0_10, %c0_11] : memref<1x300xf32, #tpu.memory_space<vmem>>, vector<1x300xf32>
    tpu.vector_store %arg5[%c0_10, %c0_11], %14 {strides = array<i32>} : memref<1x300xf32, #tpu.memory_space<vmem>>, vector<1x300xf32>,
    %c0_12 = arith.constant 0 : index
    %c0_13 = arith.constant 0 : index
    %16 = vector.load %arg6[%c0_12, %c0_13] : memref<1x300xf32, #tpu.memory_space<vmem>>, vector<1x300xf32>
    %17 = arith.mulf %7, %7 : vector<128x300xf32>
    %cst_14 = arith.constant dense<0.000000e+00> : vector<300xf32>
    %18 = vector.multi_reduction <add>, %17, %cst_14 [0] : vector<128x300xf32> to vector<300xf32>
    %19 = vector.shape_cast %18 : vector<300xf32> to vector<1x300xf32>
    %20 = arith.addf %16, %19 : vector<1x300xf32>
    %c0_15 = arith.constant 0 : index
    %c0_16 = arith.constant 0 : index
    %21 = vector.load %arg6[%c0_15, %c0_16] : memref<1x300xf32, #tpu.memory_space<vmem>>, vector<1x300xf32>
    tpu.vector_store %arg6[%c0_15, %c0_16], %20 {strides = array<i32>} : memref<1x300xf32, #tpu.memory_space<vmem>>, vector<1x300xf32>,
    %c0_17 = arith.constant 0 : index
    %c0_18 = arith.constant 0 : index
    %22 = vector.load %arg4[%c0_17, %c0_18] : memref<128x300xf32, #tpu.memory_space<vmem>>, vector<128x300xf32>
    tpu.vector_store %arg4[%c0_17, %c0_18], %7 {strides = array<i32>} : memref<128x300xf32, #tpu.memory_space<vmem>>, vector<128x300xf32>,
    return
  }
  func.func @transform_0(%arg0: i32) -> (i32, i32) {
    %c0_i32 = arith.constant 0 : i32
    %c0_i32_0 = arith.constant 0 : i32
    return %arg0, %c0_i32 : i32, i32
  }
  func.func @transform_1(%arg0: i32) -> (i32, i32) {
    %c0_i32 = arith.constant 0 : i32
    %c0_i32_0 = arith.constant 0 : i32
    %c0_i32_1 = arith.constant 0 : i32
    return %c0_i32, %c0_i32_0 : i32, i32
  }
  func.func @transform_2(%arg0: i32) -> (i32, i32) {
    %c0_i32 = arith.constant 0 : i32
    %c0_i32_0 = arith.constant 0 : i32
    %c0_i32_1 = arith.constant 0 : i32
    return %c0_i32, %c0_i32_0 : i32, i32
  }
  func.func @transform_3(%arg0: i32) -> (i32, i32) {
    %c0_i32 = arith.constant 0 : i32
    %c0_i32_0 = arith.constant 0 : i32
    return %arg0, %c0_i32 : i32, i32
  }
  func.func @transform_4(%arg0: i32) -> (i32, i32) {
    %c0_i32 = arith.constant 0 : i32
    %c0_i32_0 = arith.constant 0 : i32
    %c0_i32_1 = arith.constant 0 : i32
    return %c0_i32, %c0_i32_0 : i32, i32
  }
  func.func @transform_5(%arg0: i32) -> (i32, i32) {
    %c0_i32 = arith.constant 0 : i32
    %c0_i32_0 = arith.constant 0 : i32
    %c0_i32_1 = arith.constant 0 : i32
    return %c0_i32, %c0_i32_0 : i32, i32
  }
}

</mosaic_0001>

<bundles_post_ra>
// kernel: tpu_custom_call.1
= control target key start
LH: loop header
LB: loop body
LE: loop exit
PB: predicated region body
PF: predicated region fallthrough
CT: control target
= control target key end

     0   :  { %11 = vsyncpa [#allocation3], 0  ;;  %s5282_s0 = inlined_call_operand.vmem [shape: bf16[256,784], index: 0, kind: input, shape index: {}]   ;;  %s5283_s1 = inlined_call_operand.vmem [shape: bf16[784,300], index: 1, kind: input, shape index: {}]   ;;  %s5284_s2 = inlined_call_operand.vmem [shape: f32[1,300], index: 2, kind: input, shape index: {}]   ;;  %s5285_s3 = inlined_call_operand.vmem [shape: f32[256,300], index: 3, kind: output, shape index: {0}]   ;;  %s5286_s4 = inlined_call_operand.hbm [shape: f32[1,300], index: 4, kind: output, shape index: {1}]   ;;  %s5287_s5 = inlined_call_operand.hbm [shape: f32[1,300], index: 5, kind: output, shape index: {2}]  }
   0x1   :  { %12 = vsyncpa [#allocation5], 0  ;;  %s3807_s18 = smov 0  }
   0x2 LB: > { %s3813_s19 = sadd.s32 4294967295, %s3770_s18   ;;  %p2922_p0 = scmp.ge.s32.totalorder %s3770_s18, 1  ;;  %s3770_s18 = sphi %s3807_s18, %s18_s18  }
   0x3   : > { %p186_p1 = scmp.lt.s32.totalorder %s3770_s18, 3 }
   0x5   : > { %p187_p2 = pnand %p2922_p0, %p186_p1 }
   0x7   : > { %190 = sbr.rel (%p187_p2) target bundleno = 614 (0x266), region = 32 }
   0xc   : > { %v3431_v0 = vld [vmem:[%s5283_s1 + $0xac] ss:$12 sps:$4 sm:$0xff]   ;;  %s2923_s22 = sshll.u32 %s3813_s19, 4  ;;  %v3435_v2 = vld [vmem:[%s5283_s1 + $0xa8] ss:$12 sps:$4 sm:$0xff]   ;;  %vm1572_vm0 = vcmask 130048  }
   0xd   : > { %v3433_v1 = vld [vmem:[%s5283_s1 + $0x22c] ss:$12 sps:$4 sm:$0xff]   ;;  %p217_p3 = scmp.lt.s32.totalorder %s2923_s22, 31  ;;  %1597 = vmatprep.subr.bf16.mxu0 %v3431_v0  ;;  %v3436_v3 = vld [vmem:[%s5283_s1 + $0x228] ss:$12 sps:$4 sm:$0xff]   ;;  %p3146_p4 = scmp.ne.s32.totalorder %s3813_s19, 0 }
   0xe   : > { %1710 = vmatprep.subr.bf16.mxu1 %v3433_v1  ;;  %v3437_v4 = vld [vmem:[%s5283_s1 + $0x94] ss:$12 sps:$4 sm:$0xff]   ;;  %1598 = vmatpush1.bf16.msra.mxu0 %v3435_v2  ;;  %v3441_v6 = vld [vmem:[%s5283_s1 + $0x90] ss:$12 sps:$4 sm:$0xff]   ;;  %v3447_v10 = vld [vmem:[%s5283_s1 + $0x78] ss:$12 sps:$4 sm:$0xff]  }
   0xf   : > { %1711 = vmatpush1.bf16.msra.mxu1 %v3436_v3  ;;  %v3439_v5 = vld [vmem:[%s5283_s1 + $0x214] ss:$12 sps:$4 sm:$0xff]   ;;  %s5410_s22 = smov (!%p217_p3, %s2923_s22), 31  ;;  %1599 = vmatprep.subr.bf16.mxu0 %v3437_v4  ;;  %v3442_v7 = vld [vmem:[%s5283_s1 + $0x210] ss:$12 sps:$4 sm:$0xff]  }
  0x10   : > { %1712 = vmatprep.subr.bf16.mxu1 %v3439_v5  ;;  %v3443_v8 = vld [vmem:[%s5283_s1 + $0x7c] ss:$12 sps:$4 sm:$0xff]   ;;  %s3405_s14 = smul.u32 24, %s5410_s22  ;;  %v3448_v11 = vld [vmem:[%s5283_s1 + $0x1f8] ss:$12 sps:$4 sm:$0xff]  }
  0x11   : > { %v3445_v9 = vld [vmem:[%s5283_s1 + $0x1fc] ss:$12 sps:$4 sm:$0xff]   ;;  %v3449_v12 = vld [vmem:[%s5283_s1 + $0x64] ss:$12 sps:$4 sm:$0xff]   ;;  %v3453_v14 = vld [vmem:[%s5283_s1 + $0x60] ss:$12 sps:$4 sm:$0xff]  }
  0x12   : > { %1600 = vmatpush1.bf16.msra.mxu0 %v3441_v6  ;;  %s3863_s28 = scalar_lea.vmem %s5285_s3, %s3405_s14  ;;  %v3451_v13 = vld [vmem:[%s5283_s1 + $0x1e4] ss:$12 sps:$4 sm:$0xff]   ;;  %v3454_v15 = vld [vmem:[%s5283_s1 + $0x1e0] ss:$12 sps:$4 sm:$0xff]   ;;  %v3459_v18 = vld [vmem:[%s5283_s1 + $0x48] ss:$12 sps:$4 sm:$0xff]  }
  0x13   : > { %1713 = vmatpush1.bf16.msra.mxu1 %v3442_v7  ;;  %1601 = vmatprep.subr.bf16.mxu0 %v3443_v8  ;;  %v3455_v16 = vld [vmem:[%s5283_s1 + $0x4c] ss:$12 sps:$4 sm:$0xff]   ;;  %v3460_v19 = vld [vmem:[%s5283_s1 + $0x1c8] ss:$12 sps:$4 sm:$0xff]   ;;  %v3465_v22 = vld [vmem:[%s5283_s1 + $0x30] ss:$12 sps:$4 sm:$0xff]  }
  0x14   : > { %1714 = vmatprep.subr.bf16.mxu1 %v3445_v9  ;;  %v3457_v17 = vld [vmem:[%s5283_s1 + $0x1cc] ss:$12 sps:$4 sm:$0xff]   ;;  %v3461_v20 = vld [vmem:[%s5283_s1 + $0x34] ss:$12 sps:$4 sm:$0xff]   ;;  %v3466_v23 = vld [vmem:[%s5283_s1 + $0x1b0] ss:$12 sps:$4 sm:$0xff]  }
  0x15   : > { %v3463_v21 = vld [vmem:[%s5283_s1 + $0x1b4] ss:$12 sps:$4 sm:$0xff]   ;;  %v3467_v24 = vld [vmem:[%s5283_s1 + $0x1c] ss:$12 sps:$4 sm:$0xff]   ;;  %v3471_v26 = vld [vmem:[%s5283_s1 + $0x18] ss:$12 sps:$4 sm:$0xff]  }
  0x16   : > { %1602 = vmatpush1.bf16.msra.mxu0 %v3447_v10  ;;  %v3469_v25 = vld [vmem:[%s5283_s1 + $0x19c] ss:$12 sps:$4 sm:$0xff]   ;;  %v3472_v27 = vld [vmem:[%s5283_s1 + $0x198] ss:$12 sps:$4 sm:$0xff]   ;;  %v3477_v30 = vld [vmem:[%s5283_s1] ss:$12 sps:$4 sm:$0xff]  }
  0x17   : > { %1715 = vmatpush1.bf16.msra.mxu1 %v3448_v11  ;;  %1603 = vmatprep.subr.bf16.mxu0 %v3449_v12  ;;  %v3473_v28 = vld [vmem:[%s5283_s1 + $0x4] ss:$12 sps:$4 sm:$0xff]   ;;  %v3478_v31 = vld [vmem:[%s5283_s1 + $0x180] ss:$12 sps:$4 sm:$0xff]   ;;  %v3483_v34 = vld [vmem:[%s5283_s1 + $0x168] ss:$12 sps:$4 sm:$0xff]  }
  0x18   : > { %1716 = vmatprep.subr.bf16.mxu1 %v3451_v13  ;;  %v3475_v29 = vld [vmem:[%s5283_s1 + $0x184] ss:$12 sps:$4 sm:$0xff]   ;;  %v3479_v32 = vld [vmem:[%s5283_s1 + $0x16c] ss:$12 sps:$4 sm:$0xff]   ;;  %v3484_v35 = vld [vmem:[%s5283_s1 + $0x2e8] ss:$12 sps:$4 sm:$0xff]  }
  0x19   : > { %v3481_v33 = vld [vmem:[%s5283_s1 + $0x2ec] ss:$12 sps:$4 sm:$0xff]   ;;  %v3485_v36 = vld [vmem:[%s5283_s1 + $0x154] ss:$12 sps:$4 sm:$0xff]   ;;  %v3489_v38 = vld [vmem:[%s5283_s1 + $0x150] ss:$12 sps:$4 sm:$0xff]  }
  0x1a   : > { %1604 = vmatpush1.bf16.msra.mxu0 %v3453_v14  ;;  %v3487_v37 = vld [vmem:[%s5283_s1 + $0x2d4] ss:$12 sps:$4 sm:$0xff]   ;;  %v3490_v39 = vld [vmem:[%s5283_s1 + $0x2d0] ss:$12 sps:$4 sm:$0xff]   ;;  %s3404_s20 = smul.u32 28, %s5410_s22 }
  0x1b   : > { %1717 = vmatpush1.bf16.msra.mxu1 %v3454_v15  ;;  %1605 = vmatprep.subr.bf16.mxu0 %v3455_v16  ;;  %v3491_v40 = vld [vmem:[%s5283_s1 + $0x13c] ss:$12 sps:$4 sm:$0xff]   ;;  %v3495_v42 = vld [vmem:[%s5283_s1 + $0x138] ss:$12 sps:$4 sm:$0xff]   ;;  %v3501_v46 = vld [vmem:[%s5283_s1 + $0x120] ss:$12 sps:$4 sm:$0xff]  }
  0x1c   : > { %1718 = vmatprep.subr.bf16.mxu1 %v3457_v17  ;;  %v3493_v41 = vld [vmem:[%s5283_s1 + $0x2bc] ss:$12 sps:$4 sm:$0xff]   ;;  %v3496_v43 = vld [vmem:[%s5283_s1 + $0x2b8] ss:$12 sps:$4 sm:$0xff]   ;;  %s3965_s7 = scalar_lea.vmem %s5282_s0, %s3404_s20  ;;  %v3502_v47 = vld [vmem:[%s5283_s1 + $0x2a0] ss:$12 sps:$4 sm:$0xff]  }
  0x1d   : > { %v3497_v44 = vld [vmem:[%s5283_s1 + $0x124] ss:$12 sps:$4 sm:$0xff]   ;;  %v3503_v48 = vld [vmem:[%s5283_s1 + $0x10c] ss:$12 sps:$4 sm:$0xff]   ;;  %v3507_v52 = vld [vmem:[%s5283_s1 + $0x108] ss:$12 sps:$4 sm:$0xff]  }
  0x1e   : > { %1606 = vmatpush1.bf16.msra.mxu0 %v3459_v18  ;;  %v3499_v45 = vld [vmem:[%s5283_s1 + $0x2a4] ss:$12 sps:$4 sm:$0xff]   ;;  %v3505_v50 = vld [vmem:[%s5283_s1 + $0x28c] ss:$12 sps:$4 sm:$0xff]   ;;  %v3508_v53 = vld [vmem:[%s5283_s1 + $0x288] ss:$12 sps:$4 sm:$0xff]  }
  0x1f   : > { %1719 = vmatpush1.bf16.msra.mxu1 %v3460_v19  ;;  %1607 = vmatprep.subr.bf16.mxu0 %v3461_v20  ;;  %v3980_v49 = vld [vmem:[%s3965_s7 + $0x4] ss:$28 sps:$4 sm:$0xff]   ;;  %v3532_v51 = vld [vmem:[%s3965_s7 + $0xc] ss:$28 sps:$4 sm:$0xff]   ;;  %v3513_v56 = vld [vmem:[%s5283_s1 + $0xf0] ss:$12 sps:$4 sm:$0xff]  }
  0x20   : > { %1720 = vmatprep.subr.bf16.mxu1 %v3463_v21  ;;  %1629 = vmatprep.mubr.bf16.mxu0 %v3980_v49  ;;  %v3509_v54 = vld [vmem:[%s5283_s1 + $0xf4] ss:$12 sps:$4 sm:$0xff]   ;;  %v3514_v57 = vld [vmem:[%s5283_s1 + $0x270] ss:$12 sps:$4 sm:$0xff]   ;;  %v3519_v60 = vld [vmem:[%s5283_s1 + $0xd8] ss:$12 sps:$4 sm:$0xff]  }
  0x21   : > { %1742 = vmatprep.mubr.bf16.mxu1 %v3532_v51  ;;  %v3511_v55 = vld [vmem:[%s5283_s1 + $0x274] ss:$12 sps:$4 sm:$0xff]   ;;  %v3515_v58 = vld [vmem:[%s5283_s1 + $0xdc] ss:$12 sps:$4 sm:$0xff]   ;;  %v3520_v61 = vld [vmem:[%s5283_s1 + $0x258] ss:$12 sps:$4 sm:$0xff]  }
  0x22   : > { %1608 = vmatpush1.bf16.msra.mxu0 %v3465_v22  ;;  %v3517_v59 = vld [vmem:[%s5283_s1 + $0x25c] ss:$12 sps:$4 sm:$0xff]   ;;  %v3521_v62 = vld [vmem:[%s5283_s1 + $0xc4] ss:$12 sps:$4 sm:$0xff]   ;;  %v3525_v0 = vld [vmem:[%s5283_s1 + $0xc0] ss:$12 sps:$4 sm:$0xff]  }
  0x23   : > { %1721 = vmatpush1.bf16.msra.mxu1 %v3466_v23  ;;  %1609 = vmatprep.subr.bf16.mxu0 %v3467_v24  ;;  %v3523_v63 = vld [vmem:[%s5283_s1 + $0x244] ss:$12 sps:$4 sm:$0xff]   ;;  %v3526_v1 = vld [vmem:[%s5283_s1 + $0x240] ss:$12 sps:$4 sm:$0xff]   ;;  %v3533_v5 = vld [vmem:[%s5283_s1 + $0x3a8] ss:$12 sps:$4 sm:$0xff]  }
  0x24   : > { %1722 = vmatprep.subr.bf16.mxu1 %v3469_v25  ;;  %v3535_v2 = vld [vmem:[%s5283_s1 + $0x3ac] ss:$12 sps:$4 sm:$0xff]   ;;  %v4033_v3 = vld [vmem:[%s3965_s7] ss:$28 sps:$4 sm:$0xff]   ;;  %v4036_v4 = vld [vmem:[%s3965_s7 + $0x8] ss:$28 sps:$4 sm:$0xff]  }
  0x25   : > { %v3538_v6 = vld [vmem:[%s5283_s1 + $0x394] ss:$12 sps:$4 sm:$0xff]   ;;  %v4045_v7 = vld [vmem:[%s3965_s7 + $0x3c] ss:$28 sps:$4 sm:$0xff]   ;;  %v3550_v14 = vld [vmem:[%s5283_s1 + $0x364] ss:$12 sps:$4 sm:$0xff]  }
  0x26   : > { %1610 = vmatpush1.bf16.msra.mxu0 %v3471_v26  ;;  %v4048_v8 = vld [vmem:[%s3965_s7 + $0x44] ss:$28 sps:$4 sm:$0xff]   ;;  %v3536_v9 = vld [vmem:[%s5283_s1 + $0x390] ss:$12 sps:$4 sm:$0xff]   ;;  %v4061_v11 = vld [vmem:[%s3965_s7 + $0x38] ss:$28 sps:$4 sm:$0xff]  }
  0x27   : > { %1723 = vmatpush1.bf16.msra.mxu1 %v3472_v27  ;;  %1611 = vmatprep.subr.bf16.mxu0 %v3473_v28  ;;  %v3547_v10 = vld [vmem:[%s5283_s1 + $0x37c] ss:$12 sps:$4 sm:$0xff]   ;;  %v3545_v13 = vld [vmem:[%s5283_s1 + $0x378] ss:$12 sps:$4 sm:$0xff]   ;;  %v4073_v15 = vld [vmem:[%s3965_s7 + $0x74] ss:$28 sps:$4 sm:$0xff]  }
  0x28   : > { %1724 = vmatprep.subr.bf16.mxu1 %v3475_v29  ;;  %v4064_v12 = vld [vmem:[%s3965_s7 + $0x40] ss:$28 sps:$4 sm:$0xff]   ;;  %v3559_v18 = vld [vmem:[%s5283_s1 + $0x34c] ss:$12 sps:$4 sm:$0xff]   ;;  %v3557_v21 = vld [vmem:[%s5283_s1 + $0x348] ss:$12 sps:$4 sm:$0xff]  }
  0x29   : > { %v4076_v16 = vld [vmem:[%s3965_s7 + $0x7c] ss:$28 sps:$4 sm:$0xff]   ;;  %v3548_v17 = vld [vmem:[%s5283_s1 + $0x360] ss:$12 sps:$4 sm:$0xff]   ;;  %v4104_v24 = vld [vmem:[%s3965_s7 + $0xb4] ss:$28 sps:$4 sm:$0xff]  }
  0x2a   : > { %1612 = vmatpush1.bf16.msra.mxu0 %v3477_v30  ;;  %v4089_v19 = vld [vmem:[%s3965_s7 + $0x70] ss:$28 sps:$4 sm:$0xff]   ;;  %v4092_v20 = vld [vmem:[%s3965_s7 + $0x78] ss:$28 sps:$4 sm:$0xff]   ;;  %v3571_v26 = vld [vmem:[%s5283_s1 + $0x31c] ss:$12 sps:$4 sm:$0xff]  }
  0x2b   : > { %1725 = vmatpush1.bf16.msra.mxu1 %v3478_v31  ;;  %1613 = vmatprep.subr.bf16.mxu0 %v3479_v32  ;;  %v3562_v22 = vld [vmem:[%s5283_s1 + $0x334] ss:$12 sps:$4 sm:$0xff]   ;;  %v4101_v23 = vld [vmem:[%s3965_s7 + $0xac] ss:$28 sps:$4 sm:$0xff]   ;;  %v3560_v25 = vld [vmem:[%s5283_s1 + $0x330] ss:$12 sps:$4 sm:$0xff]  }
  0x2c   : > { %1726 = vmatprep.subr.bf16.mxu1 %v3481_v33  ;;  %v4117_v27 = vld [vmem:[%s3965_s7 + $0xa8] ss:$28 sps:$4 sm:$0xff]   ;;  %v4120_v28 = vld [vmem:[%s3965_s7 + $0xb0] ss:$28 sps:$4 sm:$0xff]  }
  0x2d   : > { %v3569_v29 = vld [vmem:[%s5283_s1 + $0x318] ss:$12 sps:$4 sm:$0xff]   ;;  %v4132_v32 = vld [vmem:[%s3965_s7 + $0xec] ss:$28 sps:$4 sm:$0xff]  }
  0x2e   : > { %1614 = vmatpush2.bf16.msra.mxu0 %v3483_v34  ;;  %v3574_v30 = vld [vmem:[%s5283_s1 + $0x304] ss:$12 sps:$4 sm:$0xff]   ;;  %v3572_v33 = vld [vmem:[%s5283_s1 + $0x300] ss:$12 sps:$4 sm:$0xff]  }
  0x2f   : > { %1727 = vmatpush2.bf16.msra.mxu1 %v3484_v35  ;;  %1615 = vmatprep.subr.bf16.mxu0 %v3485_v36  ;;  %v4129_v31 = vld [vmem:[%s3965_s7 + $0xe4] ss:$28 sps:$4 sm:$0xff]   ;;  %v3583_v34 = vld [vmem:[%s5283_s1 + $0x46c] ss:$12 sps:$4 sm:$0xff]  }
  0x30   : > { %1728 = vmatprep.subr.bf16.mxu1 %v3487_v37  ;;  %v4145_v35 = vld [vmem:[%s3965_s7 + $0xe0] ss:$28 sps:$4 sm:$0xff]   ;;  %v4148_v36 = vld [vmem:[%s3965_s7 + $0xe8] ss:$28 sps:$4 sm:$0xff]   ;;  %v3607_v51 = vld [vmem:[%s5283_s1 + $0x40c] ss:$12 sps:$4 sm:$0xff]  }
  0x31   : > { %v3581_v37 = vld [vmem:[%s5283_s1 + $0x468] ss:$12 sps:$4 sm:$0xff]  }
  0x32   : > { %1616 = vmatpush2.bf16.msra.mxu0 %v3489_v38  ;;  %v3586_v38 = vld [vmem:[%s5283_s1 + $0x454] ss:$12 sps:$4 sm:$0xff]  }
  0x33   : > { %1729 = vmatpush2.bf16.msra.mxu1 %v3490_v39  ;;  %1617 = vmatprep.subr.bf16.mxu0 %v3491_v40  ;;  %v4157_v39 = vld [vmem:[%s3965_s7 + $0x11c] ss:$28 sps:$4 sm:$0xff]   ;;  %v4160_v40 = vld [vmem:[%s3965_s7 + $0x124] ss:$28 sps:$4 sm:$0xff]  }
  0x34   : > { %1730 = vmatprep.subr.bf16.mxu1 %v3493_v41  ;;  %v3584_v41 = vld [vmem:[%s5283_s1 + $0x450] ss:$12 sps:$4 sm:$0xff]  }
  0x36   : > { %1618 = vmatpush2.bf16.msra.mxu0 %v3495_v42  ;;  %v3595_v42 = vld [vmem:[%s5283_s1 + $0x43c] ss:$12 sps:$4 sm:$0xff]  }
  0x37   : > { %1731 = vmatpush2.bf16.msra.mxu1 %v3496_v43  ;;  %1619 = vmatprep.subr.bf16.mxu0 %v3497_v44  ;;  %v4173_v43 = vld [vmem:[%s3965_s7 + $0x118] ss:$28 sps:$4 sm:$0xff]   ;;  %v4176_v44 = vld [vmem:[%s3965_s7 + $0x120] ss:$28 sps:$4 sm:$0xff]  }
  0x38   : > { %1732 = vmatprep.subr.bf16.mxu1 %v3499_v45  ;;  %v3593_v45 = vld [vmem:[%s5283_s1 + $0x438] ss:$12 sps:$4 sm:$0xff]  }
  0x3a   : > { %1620 = vmatpush2.bf16.msra.mxu0 %v3501_v46  ;;  %v3598_v46 = vld [vmem:[%s5283_s1 + $0x424] ss:$12 sps:$4 sm:$0xff]  }
  0x3b   : > { %1733 = vmatpush2.bf16.msra.mxu1 %v3502_v47  ;;  %1621 = vmatprep.subr.bf16.mxu0 %v3503_v48  ;;  %v4185_v47 = vld [vmem:[%s3965_s7 + $0x154] ss:$28 sps:$4 sm:$0xff]   ;;  %v4188_v48 = vld [vmem:[%s3965_s7 + $0x15c] ss:$28 sps:$4 sm:$0xff]  }
  0x3c   : > { %1734 = vmatprep.subr.bf16.mxu1 %v3505_v50  ;;  %v3596_v50 = vld [vmem:[%s5283_s1 + $0x420] ss:$12 sps:$4 sm:$0xff]  }
  0x3e   : > { %1622 = vmatpush2.bf16.msra.mxu0 %v3507_v52  ;;  %v4201_v52 = vld [vmem:[%s3965_s7 + $0x150] ss:$28 sps:$4 sm:$0xff]  }
  0x3f   : > { %1735 = vmatpush2.bf16.msra.mxu1 %v3508_v53  ;;  %1623 = vmatprep.subr.bf16.mxu0 %v3509_v54  ;;  %v4204_v53 = vld [vmem:[%s3965_s7 + $0x158] ss:$28 sps:$4 sm:$0xff]  }
  0x40   : > { %1736 = vmatprep.subr.bf16.mxu1 %v3511_v55  ;;  %v3605_v54 = vld [vmem:[%s5283_s1 + $0x408] ss:$12 sps:$4 sm:$0xff]  }
  0x41   : > { %v3610_v55 = vld [vmem:[%s5283_s1 + $0x3f4] ss:$12 sps:$4 sm:$0xff]  }
  0x42   : > { %1624 = vmatpush2.bf16.msra.mxu0 %v3513_v56  ;;  %v4213_v56 = vld [vmem:[%s3965_s7 + $0x18c] ss:$28 sps:$4 sm:$0xff]  }
  0x43   : > { %1737 = vmatpush2.bf16.msra.mxu1 %v3514_v57  ;;  %1625 = vmatprep.subr.bf16.mxu0 %v3515_v58  ;;  %v4216_v57 = vld [vmem:[%s3965_s7 + $0x194] ss:$28 sps:$4 sm:$0xff]  }
  0x44   : > { %1738 = vmatprep.subr.bf16.mxu1 %v3517_v59  ;;  %v3608_v58 = vld [vmem:[%s5283_s1 + $0x3f0] ss:$12 sps:$4 sm:$0xff]   ;;  %v4224_v59 = vld [vmem:[%s3965_s7 + $0x188] ss:$28 sps:$4 sm:$0xff]  }
  0x46   : > { %1626 = vmatpush2.bf16.msra.mxu0 %v3519_v60  ;;  %v3619_v60 = vld [vmem:[%s5283_s1 + $0x3dc] ss:$12 sps:$4 sm:$0xff]  }
  0x47   : > { %1739 = vmatpush2.bf16.msra.mxu1 %v3520_v61  ;;  %1627 = vmatprep.subr.bf16.mxu0 %v3521_v62  ;;  %v4232_v61 = vld [vmem:[%s3965_s7 + $0x190] ss:$28 sps:$4 sm:$0xff]   ;;  %v3617_v62 = vld [vmem:[%s5283_s1 + $0x3d8] ss:$12 sps:$4 sm:$0xff]  }
  0x48   : > { %1740 = vmatprep.subr.bf16.mxu1 %v3523_v63  ;;  %v3622_v63 = vld [vmem:[%s5283_s1 + $0x3c4] ss:$12 sps:$4 sm:$0xff]  }
  0x4a   : > { %1628 = vmatpush2.bf16.msra.mxu0 %v3525_v0  ;;  %v4241_v0 = vld [vmem:[%s3965_s7 + $0x14] ss:$28 sps:$4 sm:$0xff]  }
  0x4b   : > { %1741 = vmatpush2.bf16.msra.mxu1 %v3526_v1  ;;  %1823 = vmatprep.subr.bf16.mxu0 %v3535_v2  ;;  %v4244_v1 = vld [vmem:[%s3965_s7 + $0x164] ss:$28 sps:$4 sm:$0xff]  }
  0x4c   : > { %3372 = vmatprep.subr.bf16.mxu1 %v3535_v2  ;;  %v3620_v2 = vld [vmem:[%s5283_s1 + $0x3c0] ss:$12 sps:$4 sm:$0xff]  }
  0x4d   : > { %1630 = vmatmul.mubr.bf16.vlgmr.msra.gmra.mxu0 %v4033_v3 }
  0x4e   : > { %1743 = vmatmul.mubr.bf16.vlgmr.msra.gmra.mxu1 %v4036_v4  ;;  %1824 = vmatpush1.bf16.msra.mxu0 %v3533_v5 }
  0x4f   : > { %3388 = vmatpush1.bf16.msra.mxu1 %v3533_v5  ;;  %1825 = vmatprep.subr.bf16.mxu0 %v3538_v6  ;;  %v3629_v5 = vld [vmem:[%s5283_s1 + $0x170] ss:$12 sps:$4 sm:$0xff]  }
  0x50   : > { %3373 = vmatprep.subr.bf16.mxu1 %v3538_v6  ;;  %1639 = vmatprep.mubr.bf16.mxu0 %v4045_v7  ;;  %v4255_v6 = vld [vmem:[%s3965_s7 + $0x10] ss:$28 sps:$4 sm:$0xff]  }
  0x51   : > { %1752 = vmatprep.mubr.bf16.mxu1 %v4048_v8 }
  0x52   : > { %1826 = vmatpush1.bf16.msra.mxu0 %v3536_v9 }
  0x53   : > { %3389 = vmatpush1.bf16.msra.mxu1 %v3536_v9  ;;  %1827 = vmatprep.subr.bf16.mxu0 %v3547_v10  ;;  %v4258_v9 = vld [vmem:[%s3965_s7 + $0x160] ss:$28 sps:$4 sm:$0xff]  }
  0x54   : > { %3374 = vmatprep.subr.bf16.mxu1 %v3547_v10  ;;  %v3633_v10 = vld [vmem:[%s5283_s1 + $0x484] ss:$12 sps:$4 sm:$0xff]  }
  0x55   : > { %1640 = vmatmul.mubr.bf16.gmra.mxu0 %v4061_v11 }
  0x56   : > { %1753 = vmatmul.mubr.bf16.gmra.mxu1 %v4064_v12  ;;  %1828 = vmatpush1.bf16.msra.mxu0 %v3545_v13 }
  0x57   : > { %3390 = vmatpush1.bf16.msra.mxu1 %v3545_v13  ;;  %1829 = vmatprep.subr.bf16.mxu0 %v3550_v14  ;;  %v3630_v13 = vld [vmem:[%s5283_s1 + $0xb0] ss:$12 sps:$4 sm:$0xff]  }
  0x58   : > { %3375 = vmatprep.subr.bf16.mxu1 %v3550_v14  ;;  %1649 = vmatprep.mubr.bf16.mxu0 %v4073_v15  ;;  %v3631_v14 = vld [vmem:[%s5283_s1 + $0x480] ss:$12 sps:$4 sm:$0xff]  }
  0x59   : > { %1762 = vmatprep.mubr.bf16.mxu1 %v4076_v16 }
  0x5a   : > { %1830 = vmatpush1.bf16.msra.mxu0 %v3548_v17 }
  0x5b   : > { %3391 = vmatpush1.bf16.msra.mxu1 %v3548_v17  ;;  %1831 = vmatprep.subr.bf16.mxu0 %v3559_v18  ;;  %v3634_v17 = vld [vmem:[%s5283_s1 + $0x158] ss:$12 sps:$4 sm:$0xff]  }
  0x5c   : > { %3376 = vmatprep.subr.bf16.mxu1 %v3559_v18  ;;  %v4275_v18 = vld [vmem:[%s3965_s7 + $0x4c] ss:$28 sps:$4 sm:$0xff]  }
  0x5d   : > { %1650 = vmatmul.mubr.bf16.gmra.mxu0 %v4089_v19 }
  0x5e   : > { %1763 = vmatmul.mubr.bf16.gmra.mxu1 %v4092_v20  ;;  %1832 = vmatpush1.bf16.msra.mxu0 %v3557_v21 }
  0x5f   : > { %3392 = vmatpush1.bf16.msra.mxu1 %v3557_v21  ;;  %1833 = vmatprep.subr.bf16.mxu0 %v3562_v22  ;;  %v4278_v21 = vld [vmem:[%s3965_s7 + $0x19c] ss:$28 sps:$4 sm:$0xff]  }
  0x60   : > { %3377 = vmatprep.subr.bf16.mxu1 %v3562_v22  ;;  %1659 = vmatprep.mubr.bf16.mxu0 %v4101_v23  ;;  %v3650_v22 = vld [vmem:[%s5283_s1 + $0x2f0] ss:$12 sps:$4 sm:$0xff]  }
  0x61   : > { %1772 = vmatprep.mubr.bf16.mxu1 %v4104_v24 }
  0x62   : > { %1834 = vmatpush1.bf16.msra.mxu0 %v3560_v25 }
  0x63   : > { %3393 = vmatpush1.bf16.msra.mxu1 %v3560_v25  ;;  %1835 = vmatprep.subr.bf16.mxu0 %v3571_v26  ;;  %v3639_v25 = vld [vmem:[%s5283_s1 + $0x98] ss:$12 sps:$4 sm:$0xff]  }
  0x64   : > { %3378 = vmatprep.subr.bf16.mxu1 %v3571_v26  ;;  %v4290_v26 = vld [vmem:[%s3965_s7 + $0x48] ss:$28 sps:$4 sm:$0xff]  }
  0x65   : > { %1660 = vmatmul.mubr.bf16.gmra.mxu0 %v4117_v27 }
  0x66   : > { %1773 = vmatmul.mubr.bf16.gmra.mxu1 %v4120_v28  ;;  %1836 = vmatpush1.bf16.msra.mxu0 %v3569_v29 }
  0x67   : > { %3394 = vmatpush1.bf16.msra.mxu1 %v3569_v29  ;;  %1837 = vmatprep.subr.bf16.mxu0 %v3574_v30  ;;  %v3642_v29 = vld [vmem:[%s5283_s1 + $0x140] ss:$12 sps:$4 sm:$0xff]  }
  0x68   : > { %3379 = vmatprep.subr.bf16.mxu1 %v3574_v30  ;;  %1669 = vmatprep.mubr.bf16.mxu0 %v4129_v31  ;;  %v4297_v30 = vld [vmem:[%s3965_s7 + $0x198] ss:$28 sps:$4 sm:$0xff]  }
  0x69   : > { %1782 = vmatprep.mubr.bf16.mxu1 %v4132_v32 }
  0x6a   : > { %1838 = vmatpush1.bf16.msra.mxu0 %v3572_v33 }
  0x6b   : > { %3395 = vmatpush1.bf16.msra.mxu1 %v3572_v33  ;;  %1839 = vmatprep.subr.bf16.mxu0 %v3583_v34  ;;  %v3643_v33 = vld [vmem:[%s5283_s1 + $0x80] ss:$12 sps:$4 sm:$0xff]  }
  0x6c   : > { %3380 = vmatprep.subr.bf16.mxu1 %v3583_v34  ;;  %v4303_v34 = vld [vmem:[%s3965_s7 + $0x84] ss:$28 sps:$4 sm:$0xff]  }
  0x6d   : > { %1670 = vmatmul.mubr.bf16.gmra.mxu0 %v4145_v35 }
  0x6e   : > { %1783 = vmatmul.mubr.bf16.gmra.mxu1 %v4148_v36  ;;  %1840 = vmatpush2.bf16.msra.mxu0 %v3581_v37 }
  0x6f   : > { %3396 = vmatpush2.bf16.msra.mxu1 %v3581_v37  ;;  %1841 = vmatprep.subr.bf16.mxu0 %v3586_v38  ;;  %v3648_v37 = vld [vmem:[%s5283_s1 + $0x128] ss:$12 sps:$4 sm:$0xff]  }
  0x70   : > { %3381 = vmatprep.subr.bf16.mxu1 %v3586_v38  ;;  %1679 = vmatprep.mubr.bf16.mxu0 %v4157_v39  ;;  %v3649_v38 = vld [vmem:[%s5283_s1 + $0x68] ss:$12 sps:$4 sm:$0xff]  }
  0x71   : > { %1792 = vmatprep.mubr.bf16.mxu1 %v4160_v40 }
  0x72   : > { %1842 = vmatpush2.bf16.msra.mxu0 %v3584_v41 }
  0x73   : > { %3397 = vmatpush2.bf16.msra.mxu1 %v3584_v41  ;;  %1843 = vmatprep.subr.bf16.mxu0 %v3595_v42  ;;  %v3772_v41 = vmov 0  }
  0x74   : > { %3382 = vmatprep.subr.bf16.mxu1 %v3595_v42  ;;  %v4316_v42 = vld [vmem:[%s3965_s7 + $0x80] ss:$28 sps:$4 sm:$0xff]  }
  0x75   : > { %1680 = vmatmul.mubr.bf16.gmra.mxu0 %v4173_v43 }
  0x76   : > { %1793 = vmatmul.mubr.bf16.gmra.mxu1 %v4176_v44  ;;  %1844 = vmatpush2.bf16.msra.mxu0 %v3593_v45 }
  0x77   : > { %3398 = vmatpush2.bf16.msra.mxu1 %v3593_v45  ;;  %1845 = vmatprep.subr.bf16.mxu0 %v3598_v46  ;;  %v4319_v45 = vld [vmem:[%s3965_s7 + $0x18] ss:$28 sps:$4 sm:$0xff]  }
  0x78   : > { %3383 = vmatprep.subr.bf16.mxu1 %v3598_v46  ;;  %1689 = vmatprep.mubr.bf16.mxu0 %v4185_v47  ;;  %v3656_v46 = vld [vmem:[%s5283_s1 + $0x110] ss:$12 sps:$4 sm:$0xff]  }
  0x79   : > { %1802 = vmatprep.mubr.bf16.mxu1 %v4188_v48 }
  0x7a   : > { %1846 = vmatpush2.bf16.msra.mxu0 %v3596_v50 }
  0x7b   : > { %3399 = vmatpush2.bf16.msra.mxu1 %v3596_v50  ;;  %1847 = vmatprep.subr.bf16.mxu0 %v3607_v51  ;;  %v3651_v50 = vld [vmem:[%s5283_s1 + $0x230] ss:$12 sps:$4 sm:$0xff]  }
  0x7c   : > { %3384 = vmatprep.subr.bf16.mxu1 %v3607_v51  ;;  %v4328_v51 = vld [vmem:[%s3965_s7 + $0xbc] ss:$28 sps:$4 sm:$0xff]  }
  0x7d   : > { %1690 = vmatmul.mubr.bf16.gmra.mxu0 %v4201_v52 }
  0x7e   : > { %1803 = vmatmul.mubr.bf16.gmra.mxu1 %v4204_v53  ;;  %1848 = vmatpush2.bf16.msra.mxu0 %v3605_v54 }
  0x7f   : > { %3400 = vmatpush2.bf16.msra.mxu1 %v3605_v54  ;;  %1849 = vmatprep.subr.bf16.mxu0 %v3610_v55  ;;  %v3657_v54 = vld [vmem:[%s5283_s1 + $0x50] ss:$12 sps:$4 sm:$0xff]  }
  0x80   : > { %3385 = vmatprep.subr.bf16.mxu1 %v3610_v55  ;;  %1699 = vmatprep.mubr.bf16.mxu0 %v4213_v56  ;;  %v3658_v55 = vld [vmem:[%s5283_s1 + $0x2d8] ss:$12 sps:$4 sm:$0xff]  }
  0x81   : > { %1812 = vmatprep.mubr.bf16.mxu1 %v4216_v57 }
  0x82   : > { %1850 = vmatpush2.bf16.msra.mxu0 %v3608_v58 }
  0x83   : > { %3401 = vmatpush2.bf16.msra.mxu1 %v3608_v58  ;;  %1851 = vmatprep.subr.bf16.mxu0 %v3619_v60  ;;  %v3660_v58 = vld [vmem:[%s5283_s1 + $0xf8] ss:$12 sps:$4 sm:$0xff]  }
  0x84   : > { %3386 = vmatprep.subr.bf16.mxu1 %v3619_v60  ;;  %v3659_v60 = vld [vmem:[%s5283_s1 + $0x218] ss:$12 sps:$4 sm:$0xff]  }
  0x85   : > { %1700 = vmatmul.mubr.bf16.gmra.mxu0 %v4224_v59 }
  0x86   : > { %1813 = vmatmul.mubr.bf16.gmra.mxu1 %v4232_v61  ;;  %1852 = vmatpush2.bf16.msra.mxu0 %v3617_v62 }
  0x87   : > { %3402 = vmatpush2.bf16.msra.mxu1 %v3617_v62  ;;  %1853 = vmatprep.subr.bf16.mxu0 %v3622_v63  ;;  %v3663_v62 = vld [vmem:[%s5283_s1 + $0x38] ss:$12 sps:$4 sm:$0xff]  }
  0x88   : > { %3387 = vmatprep.subr.bf16.mxu1 %v3622_v63  ;;  %1855 = vmatprep.mubr.bf16.mxu0 %v4241_v0  ;;  %v4351_v63 = vld [vmem:[%s3965_s7 + $0xb8] ss:$28 sps:$4 sm:$0xff]  }
  0x89   : > { %1915 = vmatprep.mubr.bf16.mxu1 %v4244_v1 }
  0x8a   : > { %1854 = vmatpush2.bf16.msra.mxu0 %v3620_v2 }
  0x8b   : > { %3403 = vmatpush2.bf16.msra.mxu1 %v3620_v2  ;;  %3153 = vmatprep.subr.bf16.mxu0 %v3629_v5  ;;  %v4354_v2 = vld [vmem:[%s3965_s7 + $0x50] ss:$28 sps:$4 sm:$0xff]  }
  0x8c   : > { %1950 = vmatprep.subr.bf16.mxu1 %v3633_v10  ;;  %v3667_v5 = vld [vmem:[%s5283_s1 + $0x2c0] ss:$12 sps:$4 sm:$0xff]  }
  0x8d   : > { %1856 = vmatmul.mubr.bf16.vlgmr.msra.gmra.mxu0 %v4255_v6  ;;  %v3666_v10 = vld [vmem:[%s5283_s1 + $0xe0] ss:$12 sps:$4 sm:$0xff]  }
  0x8e   : > { %1916 = vmatmul.mubr.bf16.vlgmr.msra.gmra.mxu1 %v4258_v9  ;;  %3154 = vmatpush3.bf16.msra.mxu0 %v3630_v13  ;;  %v4363_v13 = vld [vmem:[%s3965_s7 + $0xf4] ss:$28 sps:$4 sm:$0xff]  }
  0x8f   : > { %1951 = vmatpush1.bf16.msra.mxu1 %v3631_v14  ;;  %3155 = vmatprep.subr.bf16.mxu0 %v3634_v17  ;;  %v3668_v14 = vld [vmem:[%s5283_s1 + $0x20] ss:$12 sps:$4 sm:$0xff]  }
  0x90   : > { %1865 = vmatprep.mubr.bf16.mxu0 %v4275_v18  ;;  %1925 = vmatprep.mubr.bf16.mxu1 %v4278_v21  ;;  %v3669_v17 = vld [vmem:[%s5283_s1 + $0x200] ss:$12 sps:$4 sm:$0xff]  }
  0x91   : > { %3217 = vmatprep.subr.bf16.mxu1 %v3650_v22  ;;  %v3674_v22 = vld [vmem:[%s5283_s1 + $0xc8] ss:$12 sps:$4 sm:$0xff]  }
  0x92   : > { %3156 = vmatpush3.bf16.msra.mxu0 %v3639_v25  ;;  %v3676_v25 = vld [vmem:[%s5283_s1 + $0x2a8] ss:$12 sps:$4 sm:$0xff]  }
  0x93   : > { %3157 = vmatprep.subr.bf16.mxu0 %v3642_v29  ;;  %v3675_v29 = vld [vmem:[%s5283_s1 + $0x8] ss:$12 sps:$4 sm:$0xff]  }
  0x95   : > { %1866 = vmatmul.mubr.bf16.gmra.mxu0 %v4290_v26 }
  0x96   : > { %1926 = vmatmul.mubr.bf16.gmra.mxu1 %v4297_v30  ;;  %3158 = vmatpush3.bf16.msra.mxu0 %v3643_v33  ;;  %v3677_v33 = vld [vmem:[%s5283_s1 + $0x1e8] ss:$12 sps:$4 sm:$0xff]  }
  0x97   : > { %1875 = vmatprep.mubr.bf16.mxu0 %v4303_v34  ;;  %1968 = vmatprep.mubr.bf16.mxu1 %v3772_v41 }
  0x98   : > { %3159 = vmatprep.subr.bf16.mxu0 %v3648_v37  ;;  %v3679_v37 = vld [vmem:[%s5283_s1 + $0x470] ss:$12 sps:$4 sm:$0xff]  }
  0x9a   : > { %3160 = vmatpush3.bf16.msra.mxu0 %v3649_v38  ;;  %v3681_v38 = vld [vmem:[%s5283_s1 + $0x290] ss:$12 sps:$4 sm:$0xff]  }
  0x9b   : > { %3161 = vmatprep.subr.bf16.mxu0 %v3656_v46  ;;  %v4395_v46 = vld [vmem:[%s3965_s7 + $0xf0] ss:$28 sps:$4 sm:$0xff]  }
  0x9d   : > { %1876 = vmatmul.mubr.bf16.gmra.mxu0 %v4316_v42 }
  0x9e   : > { %3130 = vmatmul.mubr.msk.bf16.vlgmr.msra.gmra.mxu1 %vm1572_vm0, %v4319_v45  ;;  %1885 = vmatprep.mubr.bf16.mxu0 %v4328_v51 }
  0x9f   : > { %3218 = vmatpush3.bf16.msra.mxu1 %v3651_v50  ;;  %1978 = vmatprep.mubr.bf16.mxu1 %v3772_v41  ;;  %v4398_v50 = vld [vmem:[%s3965_s7 + $0x88] ss:$28 sps:$4 sm:$0xff]  }
  0xa0   : > { %3162 = vmatpush3.bf16.msra.mxu0 %v3657_v54  ;;  %3219 = vmatprep.subr.bf16.mxu1 %v3658_v55  ;;  %v4401_v54 = vld [vmem:[%s3965_s7 + $0x12c] ss:$28 sps:$4 sm:$0xff]   ;;  %v3682_v55 = vld [vmem:[%s5283_s1 + $0x1d0] ss:$12 sps:$4 sm:$0xff]  }
  0xa1   : > { %3163 = vmatprep.subr.bf16.mxu0 %v3660_v58  ;;  %v3686_v58 = vld [vmem:[%s5283_s1 + $0x278] ss:$12 sps:$4 sm:$0xff]  }
  0xa3   : > { %3220 = vmatpush3.bf16.msra.mxu1 %v3659_v60  ;;  %v3687_v60 = vld [vmem:[%s5283_s1 + $0x1b8] ss:$12 sps:$4 sm:$0xff]  }
  0xa4   : > { %3164 = vmatpush3.bf16.msra.mxu0 %v3663_v62  ;;  %3221 = vmatprep.subr.bf16.mxu1 %v3667_v5  ;;  %v3691_v62 = vld [vmem:[%s5283_s1 + $0x260] ss:$12 sps:$4 sm:$0xff]   ;;  %v4421_v5 = vld [vmem:[%s3965_s7 + $0x128] ss:$28 sps:$4 sm:$0xff]  }
  0xa5   : > { %3165 = vmatprep.subr.bf16.mxu0 %v3666_v10  ;;  %1886 = vmatmul.mubr.bf16.gmra.mxu0 %v4351_v63  ;;  %v4424_v10 = vld [vmem:[%s3965_s7 + $0xc0] ss:$28 sps:$4 sm:$0xff]  }
  0xa6   : > { %3131 = vmatmul.mubr.msk.bf16.gmra.mxu1 %vm1572_vm0, %v4354_v2  ;;  %1895 = vmatprep.mubr.bf16.mxu0 %v4363_v13 }
  0xa7   : > { %1988 = vmatprep.mubr.bf16.mxu1 %v3772_v41  ;;  %3222 = vmatpush3.bf16.msra.mxu1 %v3669_v17  ;;  %v3696_v17 = vld [vmem:[%s5283_s1 + $0x248] ss:$12 sps:$4 sm:$0xff]  }
  0xa8   : > { %3166 = vmatpush3.bf16.msra.mxu0 %v3668_v14  ;;  %3223 = vmatprep.subr.bf16.mxu1 %v3676_v25  ;;  %v3692_v14 = vld [vmem:[%s5283_s1 + $0x1a0] ss:$12 sps:$4 sm:$0xff]   ;;  %v3700_v25 = vld [vmem:[%s5283_s1 + $0x488] ss:$12 sps:$4 sm:$0xff]  }
  0xa9   : > { %3167 = vmatprep.subr.bf16.mxu0 %v3674_v22  ;;  %v3697_v22 = vld [vmem:[%s5283_s1 + $0x188] ss:$12 sps:$4 sm:$0xff]  }
  0xab   : > { %3224 = vmatpush3.bf16.msra.mxu1 %v3677_v33  ;;  %v3680_v33 = vld [vmem:[%s5283_s1 + $0x3b0] ss:$12 sps:$4 sm:$0xff]  }
  0xac   : > { %3168 = vmatpush3.bf16.msra.mxu0 %v3675_v29  ;;  %3225 = vmatprep.subr.bf16.mxu1 %v3681_v38  ;;  %v4444_v29 = vld [vmem:[%s3965_s7 + $0xf8] ss:$28 sps:$4 sm:$0xff]   ;;  %v3689_v38 = vld [vmem:[%s5283_s1 + $0x440] ss:$12 sps:$4 sm:$0xff]  }
  0xad   : > { %3281 = vmatprep.subr.bf16.mxu0 %v3679_v37  ;;  %1896 = vmatmul.mubr.bf16.gmra.mxu0 %v4395_v46  ;;  %v3685_v37 = vld [vmem:[%s5283_s1 + $0x398] ss:$12 sps:$4 sm:$0xff]  }
  0xae   : > { %3132 = vmatmul.mubr.msk.bf16.gmra.mxu1 %vm1572_vm0, %v4398_v50  ;;  %1905 = vmatprep.mubr.bf16.mxu0 %v4401_v54 }
  0xaf   : > { %1998 = vmatprep.mubr.bf16.mxu1 %v3772_v41  ;;  %3226 = vmatpush3.bf16.msra.mxu1 %v3682_v55  ;;  %v4464_v55 = vld [vmem:[%s3965_s7 + $0x130] ss:$28 sps:$4 sm:$0xff]  }
  0xb0   : > { %3227 = vmatprep.subr.bf16.mxu1 %v3686_v58  ;;  %v3694_v58 = vld [vmem:[%s5283_s1 + $0x428] ss:$12 sps:$4 sm:$0xff]  }
  0xb3   : > { %3228 = vmatpush3.bf16.msra.mxu1 %v3687_v60  ;;  %v3698_v60 = vld [vmem:[%s5283_s1 + $0x410] ss:$12 sps:$4 sm:$0xff]  }
  0xb4   : > { %3229 = vmatprep.subr.bf16.mxu1 %v3691_v62  ;;  %v4484_v62 = vld [vmem:[%s3965_s7 + $0x168] ss:$28 sps:$4 sm:$0xff]  }
  0xb5   : > { %1906 = vmatmul.mubr.bf16.gmra.mxu0 %v4421_v5 }
  0xb6   : > { %3133 = vmatmul.mubr.msk.bf16.gmra.mxu1 %vm1572_vm0, %v4424_v10  ;;  %2081 = vmatprep.mubr.bf16.mxu0 %v3980_v49  ;;  %v3684_v49 = vld [vmem:[%s5283_s1 + $0x458] ss:$12 sps:$4 sm:$0xff]  }
  0xb7   : > { %2008 = vmatprep.mubr.bf16.mxu1 %v3772_v41  ;;  %3230 = vmatpush3.bf16.msra.mxu1 %v3692_v14  ;;  %v3702_v14 = vld [vmem:[%s5283_s1 + $0x338] ss:$12 sps:$4 sm:$0xff]  }
  0xb8   : > { %3231 = vmatprep.subr.bf16.mxu1 %v3696_v17  ;;  %v3703_v17 = vld [vmem:[%s5283_s1 + $0x3e0] ss:$12 sps:$4 sm:$0xff]  }
  0xbb   : > { %3232 = vmatpush3.bf16.msra.mxu1 %v3697_v22  ;;  %v4504_v22 = vld [vmem:[%s3965_s7 + $0x1a0] ss:$28 sps:$4 sm:$0xff]  }
  0xbc   : > { %3354 = vmatprep.subr.bf16.mxu1 %v3700_v25 }
  0xbd   : > { %2082 = vmatmul.mubr.bf16.vlgmr.msra.gmra.mxu0 %v4033_v3  ;;  %v3690_v3 = vld [vmem:[%s5283_s1 + $0x380] ss:$12 sps:$4 sm:$0xff]  }
  0xbe   : > { %3134 = vmatmul.mubr.msk.bf16.gmra.mxu1 %vm1572_vm0, %v4444_v29  ;;  %3282 = vmatpush3.bf16.msra.mxu0 %v3680_v33  ;;  %v3706_v33 = vld [vmem:[%s5283_s1 + $0x308] ss:$12 sps:$4 sm:$0xff]  }
  0xbf   : > { %2018 = vmatprep.mubr.bf16.mxu1 %v3772_v41  ;;  %2089 = vmatprep.mubr.bf16.mxu0 %v4045_v7  ;;  %v3695_v7 = vld [vmem:[%s5283_s1 + $0x368] ss:$12 sps:$4 sm:$0xff]  }
  0xc0   : > { %3283 = vmatprep.subr.bf16.mxu0 %v3684_v49 }
  0xc2   : > { %3284 = vmatpush3.bf16.msra.mxu0 %v3685_v37 }
  0xc3   : > { %3285 = vmatprep.subr.bf16.mxu0 %v3689_v38 }
  0xc5   : > { %2090 = vmatmul.mubr.bf16.gmra.mxu0 %v4061_v11  ;;  %v3699_v11 = vld [vmem:[%s5283_s1 + $0x350] ss:$12 sps:$4 sm:$0xff]  }
  0xc6   : > { %3135 = vmatmul.mubr.msk.bf16.gmra.mxu1 %vm1572_vm0, %v4464_v55  ;;  %2097 = vmatprep.mubr.bf16.mxu0 %v4073_v15  ;;  %v3701_v15 = vld [vmem:[%s5283_s1 + $0x3f8] ss:$12 sps:$4 sm:$0xff]  }
  0xc7   : > { %2028 = vmatprep.mubr.bf16.mxu1 %v3772_v41  ;;  %3286 = vmatpush3.bf16.msra.mxu0 %v3690_v3 }
  0xc8   : > { %3287 = vmatprep.subr.bf16.mxu0 %v3694_v58 }
  0xcb   : > { %3288 = vmatpush3.bf16.msra.mxu0 %v3695_v7 }
  0xcc   : > { %3289 = vmatprep.subr.bf16.mxu0 %v3698_v60 }
  0xcd   : > { %2098 = vmatmul.mubr.bf16.gmra.mxu0 %v4089_v19  ;;  %v3704_v19 = vld [vmem:[%s5283_s1 + $0x320] ss:$12 sps:$4 sm:$0xff]  }
  0xce   : > { %3136 = vmatmul.mubr.msk.bf16.gmra.mxu1 %vm1572_vm0, %v4484_v62  ;;  %2105 = vmatprep.mubr.bf16.mxu0 %v4101_v23  ;;  %v3705_v23 = vld [vmem:[%s5283_s1 + $0x3c8] ss:$12 sps:$4 sm:$0xff]  }
  0xcf   : > { %2038 = vmatprep.mubr.bf16.mxu1 %v3772_v41  ;;  %3290 = vmatpush3.bf16.msra.mxu0 %v3699_v11  ;;  %v3707_v41 = vld [vmem:[%s3965_s7 + $0xc] ss:$28 sps:$4 sm:$0xff]  }
  0xd0   : > { %3291 = vmatprep.subr.bf16.mxu0 %v3701_v15 }
  0xd3   : > { %3292 = vmatpush3.bf16.msra.mxu0 %v3702_v14 }
  0xd4   : > { %3293 = vmatprep.subr.bf16.mxu0 %v3703_v17 }
  0xd5   : > { %2106 = vmatmul.mubr.bf16.gmra.mxu0 %v4117_v27 }
  0xd6   : > { %3137 = vmatmul.mubr.msk.bf16.gmra.mxu1 %vm1572_vm0, %v4504_v22  ;;  %2113 = vmatprep.mubr.bf16.mxu0 %v4129_v31 }
  0xd7   : > { %2178 = vmatprep.mubr.bf16.mxu1 %v3707_v41  ;;  %3294 = vmatpush3.bf16.msra.mxu0 %v3704_v19 }
  0xd8   : > { %3295 = vmatprep.subr.bf16.mxu0 %v3705_v23 }
  0xdb   : > { %3296 = vmatpush3.bf16.msra.mxu0 %v3706_v33 }
  0xdd   : > { %2114 = vmatmul.mubr.bf16.gmra.mxu0 %v4145_v35 }
  0xde   : > { %2179 = vmatmul.mubr.bf16.vlgmr.msra.gmra.mxu1 %v4036_v4  ;;  %2121 = vmatprep.mubr.bf16.mxu0 %v4157_v39  ;;  %v5288_v4 = vlaneseq }
  0xdf   : > { %3355 = vmatpush3.bf16.msra.mxu1 %v3700_v25  ;;  %2186 = vmatprep.mubr.bf16.mxu1 %v4048_v8 }
  0xe0   : > { %v4541_v8 = vshrl.u32 %v5288_v4, 7 }
  0xe2   : > { %5326 = vst [vmem:[#allocation8_spill] sm:$0xff] %v4541_v8 }
  0xe5   : > { %2122 = vmatmul.mubr.bf16.gmra.mxu0 %v4173_v43 }
  0xe6   : > { %2187 = vmatmul.mubr.bf16.gmra.mxu1 %v4064_v12  ;;  %2129 = vmatprep.mubr.bf16.mxu0 %v4185_v47  ;;  %v495_v12 = vsub.s32 0, %v4541_v8 }
  0xe7   : > { %2194 = vmatprep.mubr.bf16.mxu1 %v4076_v16  ;;  %v4551_v16 = vld [vmem:[%s5284_s2] sm:$0x7] }
  0xed   : > { %2130 = vmatmul.mubr.bf16.gmra.mxu0 %v4201_v52 }
  0xee   : > { %2195 = vmatmul.mubr.bf16.gmra.mxu1 %v4092_v20  ;;  %2137 = vmatprep.mubr.bf16.mxu0 %v4213_v56  ;;  %v499_v20 = vsub.s32 1, %v4541_v8 }
  0xef   : > { %2202 = vmatprep.mubr.bf16.mxu1 %v4104_v24  ;;  %v4555_v24 = vrot.slane %v4551_v16, %v495_v12 }
  0xf0   : > { %v4558_v27 = vrot.slane %v4551_v16, %v499_v20 }
  0xf5   : > { %2138 = vmatmul.mubr.bf16.gmra.mxu0 %v4224_v59 }
  0xf6   : > { %2203 = vmatmul.mubr.bf16.gmra.mxu1 %v4120_v28  ;;  %2275 = vmatprep.mubr.bf16.mxu0 %v4241_v0 }
  0xf7   : > { %2210 = vmatprep.mubr.bf16.mxu1 %v4132_v32 }
  0xfd   : > { %2276 = vmatmul.mubr.bf16.vlgmr.msra.gmra.mxu0 %v4255_v6 }
  0xfe   : > { %2211 = vmatmul.mubr.bf16.gmra.mxu1 %v4148_v36  ;;  %2283 = vmatprep.mubr.bf16.mxu0 %v4275_v18 }
  0xff   : > { %2218 = vmatprep.mubr.bf16.mxu1 %v4160_v40 }
 0x105   : > { %2284 = vmatmul.mubr.bf16.gmra.mxu0 %v4290_v26 }
 0x106   : > { %2219 = vmatmul.mubr.bf16.gmra.mxu1 %v4176_v44  ;;  %2291 = vmatprep.mubr.bf16.mxu0 %v4303_v34 }
 0x107   : > { %2226 = vmatprep.mubr.bf16.mxu1 %v4188_v48 }
 0x10d   : > { %v1631_v28 = vpop.f32.mrf.mxu0  ;;  %2292 = vmatmul.mubr.bf16.gmra.mxu0 %v4316_v42 }
 0x10e   : > { %v1744_v31 = vpop.f32.mrf.mxu1  ;;  %2227 = vmatmul.mubr.bf16.gmra.mxu1 %v4204_v53  ;;  %v1632_v32 = vadd.f32 %v1631_v28, %v4555_v24  ;;  %2299 = vmatprep.mubr.bf16.mxu0 %v4328_v51 }
 0x10f   : > { %2234 = vmatprep.mubr.bf16.mxu1 %v4216_v57  ;;  %v1633_v35 = vpop.f32.mrf.mxu0 }
 0x110   : > { %v1746_v36 = vpop.f32.mrf.mxu1  ;;  %v4565_v39 = vadd.f32 %v1744_v31, %v1632_v32  ;;  %v1634_v40 = vadd.f32 %v1633_v35, %v4558_v27 }
 0x111   : > { %v1635_v43 = vpop.f32.mrf.mxu0 }
 0x112   : > { %v1748_v44 = vpop.f32.mrf.mxu1  ;;  %v4568_v47 = vadd.f32 %v1746_v36, %v1634_v40  ;;  %v1636_v48 = vadd.f32 %v1635_v43, %v4555_v24 }
 0x113   : > { %v1637_v52 = vpop.f32.mrf.mxu0 }
 0x114   : > { %v1750_v53 = vpop.f32.mrf.mxu1  ;;  %v4571_v56 = vadd.f32 %v1748_v44, %v1636_v48  ;;  %v1638_v57 = vadd.f32 %v1637_v52, %v4558_v27 }
 0x115   : > { %v1641_v59 = vpop.f32.mrf.mxu0  ;;  %2300 = vmatmul.mubr.bf16.gmra.mxu0 %v4351_v63 }
 0x116   : > { %v1754_v0 = vpop.f32.mrf.mxu1  ;;  %2235 = vmatmul.mubr.bf16.gmra.mxu1 %v4232_v61  ;;  %v4576_v6 = vadd.f32 %v1750_v53, %v1638_v57  ;;  %v1642_v18 = vadd.f32 %v1641_v59, %v4555_v24  ;;  %2307 = vmatprep.mubr.bf16.mxu0 %v4363_v13 }
 0x117   : > { %3356 = vmatprep.mubr.msk.bf16.mxu1 %vm1572_vm0, %v4319_v45  ;;  %v1643_v26 = vpop.f32.mrf.mxu0 }
 0x118   : > { %v1756_v34 = vpop.f32.mrf.mxu1  ;;  %v4582_v42 = vadd.f32 %v1754_v0, %v1642_v18  ;;  %v1644_v51 = vadd.f32 %v1643_v26, %v4558_v27 }
 0x119   : > { %v1645_v25 = vpop.f32.mrf.mxu0 }
 0x11a   : > { %v1758_v49 = vpop.f32.mrf.mxu1  ;;  %v4585_v61 = vadd.f32 %v1756_v34, %v1644_v51  ;;  %v1646_v63 = vadd.f32 %v1645_v25, %v4555_v24 }
 0x11b   : > { %v1647_v37 = vpop.f32.mrf.mxu0 }
 0x11c   : > { %v1760_v38 = vpop.f32.mrf.mxu1  ;;  %v4588_v3 = vadd.f32 %v1758_v49, %v1646_v63  ;;  %v1648_v13 = vadd.f32 %v1647_v37, %v4558_v27 }
 0x11d   : > { %v1651_v58 = vpop.f32.mrf.mxu0  ;;  %2308 = vmatmul.mubr.bf16.gmra.mxu0 %v4395_v46 }
 0x11e   : > { %v1764_v45 = vpop.f32.mrf.mxu1  ;;  %3357 = vmatmul.mubr.msk.bf16.vlgmr.msra.gmra.mxu1 %vm1572_vm0, %v4354_v2  ;;  %v4594_v7 = vadd.f32 %v1760_v38, %v1648_v13  ;;  %v1652_v60 = vadd.f32 %v1651_v58, %v4555_v24  ;;  %2315 = vmatprep.mubr.bf16.mxu0 %v4401_v54 }
 0x11f   : > { %3360 = vmatprep.mubr.msk.bf16.mxu1 %vm1572_vm0, %v4398_v50  ;;  %v1653_v11 = vpop.f32.mrf.mxu0 }
 0x120   : > { %v1766_v15 = vpop.f32.mrf.mxu1  ;;  %v4600_v14 = vadd.f32 %v1764_v45, %v1652_v60  ;;  %v1654_v17 = vadd.f32 %v1653_v11, %v4558_v27 }
 0x121   : > { %v1655_v19 = vpop.f32.mrf.mxu0 }
 0x122   : > { %v1768_v46 = vpop.f32.mrf.mxu1  ;;  %v4603_v23 = vadd.f32 %v1766_v15, %v1654_v17  ;;  %v1656_v2 = vadd.f32 %v1655_v19, %v4555_v24 }
 0x123   : > { %v1657_v41 = vpop.f32.mrf.mxu0 }
 0x124   : > { %v1770_v33 = vpop.f32.mrf.mxu1  ;;  %v4606_v12 = vadd.f32 %v1768_v46, %v1656_v2  ;;  %v1658_v54 = vadd.f32 %v1657_v41, %v4558_v27 }
 0x125   : > { %v1661_v20 = vpop.f32.mrf.mxu0  ;;  %2316 = vmatmul.mubr.bf16.gmra.mxu0 %v4421_v5 }
 0x126   : > { %v1774_v50 = vpop.f32.mrf.mxu1  ;;  %3361 = vmatmul.mubr.msk.bf16.gmra.mxu1 %vm1572_vm0, %v4424_v10  ;;  %v4612_v28 = vadd.f32 %v1770_v33, %v1658_v54  ;;  %v1662_v31 = vadd.f32 %v1661_v20, %v4555_v24  ;;  %2323 = vmatprep.mubr.bf16.mxu0 %v4244_v1 }
 0x127   : > { %3364 = vmatprep.mubr.msk.bf16.mxu1 %vm1572_vm0, %v4444_v29  ;;  %v1663_v32 = vpop.f32.mrf.mxu0 }
 0x128   : > { %v1776_v35 = vpop.f32.mrf.mxu1  ;;  %v4618_v36 = vadd.f32 %v1774_v50, %v1662_v31  ;;  %v1664_v40 = vadd.f32 %v1663_v32, %v4558_v27 }
 0x129   : > { %v1665_v43 = vpop.f32.mrf.mxu0 }
 0x12a   : > { %v1778_v5 = vpop.f32.mrf.mxu1  ;;  %v4621_v44 = vadd.f32 %v1776_v35, %v1664_v40  ;;  %v1666_v10 = vadd.f32 %v1665_v43, %v4555_v24 }
 0x12b   : > { %v1667_v48 = vpop.f32.mrf.mxu0 }
 0x12c   : > { %v1780_v52 = vpop.f32.mrf.mxu1  ;;  %v4624_v53 = vadd.f32 %v1778_v5, %v1666_v10  ;;  %v1668_v1 = vadd.f32 %v1667_v48, %v4558_v27 }
 0x12d   : > { %v1671_v57 = vpop.f32.mrf.mxu0  ;;  %2324 = vmatmul.mubr.bf16.gmra.mxu0 %v4258_v9 }
 0x12e   : > { %v1784_v29 = vpop.f32.mrf.mxu1  ;;  %3365 = vmatmul.mubr.msk.bf16.gmra.mxu1 %vm1572_vm0, %v4464_v55  ;;  %v4630_v59 = vadd.f32 %v1780_v52, %v1668_v1  ;;  %v1672_v0 = vadd.f32 %v1671_v57, %v4555_v24  ;;  %2331 = vmatprep.mubr.bf16.mxu0 %v4278_v21 }
 0x12f   : > { %3368 = vmatprep.mubr.msk.bf16.mxu1 %vm1572_vm0, %v4484_v62  ;;  %v1673_v18 = vpop.f32.mrf.mxu0 }
 0x130   : > { %v1786_v26 = vpop.f32.mrf.mxu1  ;;  %v4636_v34 = vadd.f32 %v1784_v29, %v1672_v0  ;;  %v1674_v51 = vadd.f32 %v1673_v18, %v4558_v27 }
 0x131   : > { %v1675_v25 = vpop.f32.mrf.mxu0 }
 0x132   : > { %v1788_v9 = vpop.f32.mrf.mxu1  ;;  %v4639_v49 = vadd.f32 %v1786_v26, %v1674_v51  ;;  %v1676_v55 = vadd.f32 %v1675_v25, %v4555_v24 }
 0x133   : > { %v1677_v63 = vpop.f32.mrf.mxu0 }
 0x134   : > { %v1790_v37 = vpop.f32.mrf.mxu1  ;;  %v4642_v38 = vadd.f32 %v1788_v9, %v1676_v55  ;;  %v1678_v21 = vadd.f32 %v1677_v63, %v4558_v27 }
 0x135   : > { %v1681_v13 = vpop.f32.mrf.mxu0  ;;  %2332 = vmatmul.mubr.bf16.gmra.mxu0 %v4297_v30 }
 0x136   : > { %v1794_v62 = vpop.f32.mrf.mxu1  ;;  %3369 = vmatmul.mubr.msk.bf16.gmra.mxu1 %vm1572_vm0, %v4504_v22  ;;  %v4648_v58 = vadd.f32 %v1790_v37, %v1678_v21  ;;  %v1682_v45 = vadd.f32 %v1681_v13, %v4555_v24 }
 0x137   : > { %v1683_v60 = vpop.f32.mrf.mxu0 }
 0x138   : > { %v1796_v11 = vpop.f32.mrf.mxu1  ;;  %v4651_v15 = vadd.f32 %v1794_v62, %v1682_v45  ;;  %v1684_v17 = vadd.f32 %v1683_v60, %v4558_v27 }
 0x139   : > { %v1685_v19 = vpop.f32.mrf.mxu0 }
 0x13a   : > { %v1798_v46 = vpop.f32.mrf.mxu1  ;;  %v4654_v2 = vadd.f32 %v1796_v11, %v1684_v17  ;;  %v1686_v41 = vadd.f32 %v1685_v19, %v4555_v24 }
 0x13b   : > { %v1687_v30 = vpop.f32.mrf.mxu0 }
 0x13c   : > { %v1800_v33 = vpop.f32.mrf.mxu1  ;;  %v4657_v54 = vadd.f32 %v1798_v46, %v1686_v41  ;;  %v1688_v22 = vadd.f32 %v1687_v30, %v4558_v27 }
 0x13d   : > { %v1691_v20 = vpop.f32.mrf.mxu0 }
 0x13e   : > { %v1804_v50 = vpop.f32.mrf.mxu1  ;;  %v4660_v31 = vadd.f32 %v1800_v33, %v1688_v22  ;;  %v1692_v32 = vadd.f32 %v1691_v20, %v4555_v24 }
 0x13f   : > { %v1693_v35 = vpop.f32.mrf.mxu0 }
 0x140   : > { %v1806_v40 = vpop.f32.mrf.mxu1  ;;  %v1805_v43 = vadd.f32 %v1804_v50, %v1692_v32  ;;  %v1694_v5 = vadd.f32 %v1693_v35, %v4558_v27 }
 0x141   : > { %v1695_v10 = vpop.f32.mrf.mxu0 }
 0x142   : > { %v1808_v48 = vpop.f32.mrf.mxu1  ;;  %v1807_v52 = vadd.f32 %v1806_v40, %v1694_v5  ;;  %v1696_v1 = vadd.f32 %v1695_v10, %v4555_v24 }
 0x143   : > { %v1697_v57 = vpop.f32.mrf.mxu0 }
 0x144   : > { %v1810_v29 = vpop.f32.mrf.mxu1  ;;  %v1809_v0 = vadd.f32 %v1808_v48, %v1696_v1  ;;  %v1698_v18 = vadd.f32 %v1697_v57, %v4558_v27 }
 0x145   : > { %v1701_v26 = vpop.f32.mrf.mxu0 }
 0x146   : > { %v1814_v51 = vpop.f32.mrf.mxu1  ;;  %v1811_v25 = vadd.f32 %v1810_v29, %v1698_v18  ;;  %v1702_v9 = vadd.f32 %v1701_v26, %v4555_v24 }
 0x147   : > { %v1703_v55 = vpop.f32.mrf.mxu0 }
 0x148   : > { %v1816_v63 = vpop.f32.mrf.mxu1  ;;  %v1815_v37 = vadd.f32 %v1814_v51, %v1702_v9  ;;  %v1704_v21 = vadd.f32 %v1703_v55, %v4558_v27 }
 0x149   : > { %v1705_v13 = vpop.f32.mrf.mxu0 }
 0x14a   : > { %v1818_v62 = vpop.f32.mrf.mxu1  ;;  %v1817_v45 = vadd.f32 %v1816_v63, %v1704_v21  ;;  %v1706_v60 = vadd.f32 %v1705_v13, %v4555_v24 }
 0x14b   : > { %v1707_v11 = vpop.f32.mrf.mxu0 }
 0x14c   : > { %v1820_v17 = vpop.f32.mrf.mxu1  ;;  %v1819_v19 = vadd.f32 %v1818_v62, %v1706_v60  ;;  %v1708_v46 = vadd.f32 %v1707_v11, %v4558_v27 }
 0x14d   : > { %v1857_v41 = vpop.f32.mrf.mxu0 }
 0x14e   : > { %v1917_v30 = vpop.f32.mrf.mxu1  ;;  %v1821_v33 = vadd.f32 %v1820_v17, %v1708_v46  ;;  %v1858_v22 = vadd.f32 %v1857_v41, %v4565_v39 }
 0x14f   : > { %v4671_v20 = vadd.f32 %v1917_v30, %v1805_v43  ;;  %v1859_v50 = vpop.f32.mrf.mxu0 }
 0x150   : > { %v1919_v32 = vpop.f32.mrf.mxu1  ;;  %v1860_v35 = vadd.f32 %v1859_v50, %v4568_v47 }
 0x151   : > { %v4674_v40 = vadd.f32 %v1919_v32, %v1807_v52  ;;  %v1861_v5 = vpop.f32.mrf.mxu0 }
 0x152   : > { %v1921_v24 = vpop.f32.mrf.mxu1  ;;  %v1862_v10 = vadd.f32 %v1861_v5, %v4571_v56 }
 0x153   : > { %v4677_v48 = vadd.f32 %v1921_v24, %v1809_v0  ;;  %v1863_v27 = vpop.f32.mrf.mxu0 }
 0x154   : > { %v1923_v1 = vpop.f32.mrf.mxu1  ;;  %v1864_v57 = vadd.f32 %v1863_v27, %v4576_v6 }
 0x155   : > { %v4680_v29 = vadd.f32 %v1923_v1, %v1811_v25  ;;  %v1867_v39 = vpop.f32.mrf.mxu0 }
 0x156   : > { %v1927_v43 = vpop.f32.mrf.mxu1  ;;  %v1868_v18 = vadd.f32 %v1867_v39, %v4582_v42 }
 0x157   : > { %v4683_v26 = vadd.f32 %v1927_v43, %v1815_v37  ;;  %v1869_v47 = vpop.f32.mrf.mxu0 }
 0x158   : > { %v1929_v52 = vpop.f32.mrf.mxu1  ;;  %v1870_v51 = vadd.f32 %v1869_v47, %v4585_v61 }
 0x159   : > { %v4686_v9 = vadd.f32 %v1929_v52, %v1817_v45  ;;  %v1871_v56 = vpop.f32.mrf.mxu0 }
 0x15a   : > { %v1931_v0 = vpop.f32.mrf.mxu1  ;;  %v1872_v55 = vadd.f32 %v1871_v56, %v4588_v3 }
 0x15b   : > { %v4689_v63 = vadd.f32 %v1931_v0, %v1819_v19  ;;  %v1873_v6 = vpop.f32.mrf.mxu0 }
 0x15c   : > { %v1933_v25 = vpop.f32.mrf.mxu1  ;;  %v1874_v21 = vadd.f32 %v1873_v6, %v4594_v7 }
 0x15d   : > { %v4692_v13 = vadd.f32 %v1933_v25, %v1821_v33  ;;  %v1877_v42 = vpop.f32.mrf.mxu0 }
 0x15e   : > { %v1970_v37 = vpop.f32.mrf.mxu1  ;;  %v1878_v62 = vadd.f32 %v1877_v42, %v4600_v14 }
 0x15f   : > { %v1971_v60 = vadd.f32 %v1970_v37, %v1858_v22  ;;  %v1879_v61 = vpop.f32.mrf.mxu0 }
 0x160   : > { %v1972_v45 = vpop.f32.mrf.mxu1  ;;  %v1880_v17 = vadd.f32 %v1879_v61, %v4603_v23 }
 0x161   : > { %v4695_v11 = vmax.f32 %v1971_v60, 0.0  ;;  %v1973_v3 = vadd.f32 %v1972_v45, %v1860_v35  ;;  %v1881_v19 = vpop.f32.mrf.mxu0 }
 0x162   : > { %v1974_v46 = vpop.f32.mrf.mxu1  ;;  %v1882_v7 = vadd.f32 %v1881_v19, %v4606_v12 }
 0x163   : > { %5327 = vst [vmem:[#allocation9_spill] sm:$0xff] %v4695_v11  ;;  %v4698_v41 = vmax.f32 %v1973_v3, 0.0  ;;  %v1975_v30 = vadd.f32 %v1974_v46, %v1862_v10  ;;  %v1883_v33 = vpop.f32.mrf.mxu0 }
 0x164   : > { %v1976_v50 = vpop.f32.mrf.mxu1  ;;  %v1884_v14 = vadd.f32 %v1883_v33, %v4612_v28 }
 0x165   : > { %5328 = vst [vmem:[#allocation10_spill] sm:$0xff] %v4698_v41  ;;  %v4701_v32 = vmax.f32 %v1975_v30, 0.0  ;;  %v1977_v22 = vadd.f32 %v1976_v50, %v1864_v57  ;;  %v1887_v5 = vpop.f32.mrf.mxu0 }
 0x166   : > { %v1980_v24 = vpop.f32.mrf.mxu1  ;;  %v1888_v23 = vadd.f32 %v1887_v5, %v4618_v36 }
 0x167   : > { %5329 = vst [vmem:[#allocation11_spill] sm:$0xff] %v4701_v32  ;;  %v4704_v27 = vmax.f32 %v1977_v22, 0.0  ;;  %v1981_v35 = vadd.f32 %v1980_v24, %v1868_v18  ;;  %v1889_v1 = vpop.f32.mrf.mxu0 }
 0x168   : > { %v1982_v39 = vpop.f32.mrf.mxu1  ;;  %v1890_v12 = vadd.f32 %v1889_v1, %v4621_v44 }
 0x169   : > { %5330 = vst [vmem:[#allocation12_spill] sm:$0xff] %v4704_v27  ;;  %v4707_v43 = vmax.f32 %v1981_v35, 0.0  ;;  %v1983_v10 = vadd.f32 %v1982_v39, %v1870_v51  ;;  %v1891_v47 = vpop.f32.mrf.mxu0 }
 0x16a   : > { %v1984_v52 = vpop.f32.mrf.mxu1  ;;  %v1892_v28 = vadd.f32 %v1891_v47, %v4624_v53 }
 0x16b   : > { %5331 = vst [vmem:[#allocation13_spill] sm:$0xff] %v4707_v43  ;;  %v4710_v56 = vmax.f32 %v1983_v10, 0.0  ;;  %v1985_v57 = vadd.f32 %v1984_v52, %v1872_v55  ;;  %v1893_v0 = vpop.f32.mrf.mxu0 }
 0x16c   : > { %v1986_v6 = vpop.f32.mrf.mxu1  ;;  %v1894_v36 = vadd.f32 %v1893_v0, %v4630_v59 }
 0x16d   : > { %5332 = vst [vmem:[#allocation14_spill] sm:$0xff] %v4710_v56  ;;  %v4713_v25 = vmax.f32 %v1985_v57, 0.0  ;;  %v1987_v18 = vadd.f32 %v1986_v6, %v1874_v21  ;;  %v1897_v42 = vpop.f32.mrf.mxu0 }
 0x16e   : > { %v1990_v37 = vpop.f32.mrf.mxu1  ;;  %v1898_v44 = vadd.f32 %v1897_v42, %v4636_v34 }
 0x16f   : > { %5333 = vst [vmem:[#allocation15_spill] sm:$0xff] %v4713_v25  ;;  %v4716_v60 = vmax.f32 %v1987_v18, 0.0  ;;  %v1991_v51 = vadd.f32 %v1990_v37, %v1878_v62  ;;  %v1899_v61 = vpop.f32.mrf.mxu0 }
 0x170   : > { %v1992_v45 = vpop.f32.mrf.mxu1  ;;  %v1900_v53 = vadd.f32 %v1899_v61, %v4639_v49 }
 0x171   : > { %5334 = vst [vmem:[#allocation16_spill] sm:$0xff] %v4716_v60  ;;  %v4719_v3 = vmax.f32 %v1991_v51, 0.0  ;;  %v1993_v55 = vadd.f32 %v1992_v45, %v1880_v17  ;;  %v1901_v19 = vpop.f32.mrf.mxu0 }
 0x172   : > { %v1994_v46 = vpop.f32.mrf.mxu1  ;;  %v1902_v59 = vadd.f32 %v1901_v19, %v4642_v38 }
 0x173   : > { %5335 = vst [vmem:[#allocation17_spill] sm:$0xff] %v4719_v3  ;;  %v4722_v30 = vmax.f32 %v1993_v55, 0.0  ;;  %v1995_v21 = vadd.f32 %v1994_v46, %v1882_v7  ;;  %v1903_v33 = vpop.f32.mrf.mxu0 }
 0x174   : > { %v1996_v50 = vpop.f32.mrf.mxu1  ;;  %v1904_v34 = vadd.f32 %v1903_v33, %v4648_v58 }
 0x175   : > { %5336 = vst [vmem:[#allocation18_spill] sm:$0xff] %v4722_v30  ;;  %v4725_v22 = vmax.f32 %v1995_v21, 0.0  ;;  %v1997_v62 = vadd.f32 %v1996_v50, %v1884_v14  ;;  %v1907_v5 = vpop.f32.mrf.mxu0 }
 0x176   : > { %v2000_v24 = vpop.f32.mrf.mxu1  ;;  %v1908_v49 = vadd.f32 %v1907_v5, %v4651_v15 }
 0x177   : > { %5337 = vst [vmem:[#allocation19_spill] sm:$0xff] %v4725_v22  ;;  %v4728_v35 = vmax.f32 %v1997_v62, 0.0  ;;  %v2001_v17 = vadd.f32 %v2000_v24, %v1888_v23  ;;  %v1909_v1 = vpop.f32.mrf.mxu0 }
 0x178   : > { %v2002_v39 = vpop.f32.mrf.mxu1  ;;  %v1910_v38 = vadd.f32 %v1909_v1, %v4654_v2 }
 0x179   : > { %5338 = vst [vmem:[#allocation20_spill] sm:$0xff] %v4728_v35  ;;  %v4731_v10 = vmax.f32 %v2001_v17, 0.0  ;;  %v2003_v7 = vadd.f32 %v2002_v39, %v1890_v12  ;;  %v1911_v47 = vpop.f32.mrf.mxu0 }
 0x17a   : > { %v2004_v52 = vpop.f32.mrf.mxu1  ;;  %v1912_v58 = vadd.f32 %v1911_v47, %v4657_v54 }
 0x17b   : > { %5339 = vst [vmem:[#allocation21_spill] sm:$0xff] %v4731_v10  ;;  %v4734_v57 = vmax.f32 %v2003_v7, 0.0  ;;  %v2005_v14 = vadd.f32 %v2004_v52, %v1892_v28  ;;  %v1913_v0 = vpop.f32.mrf.mxu0 }
 0x17c   : > { %v2006_v6 = vpop.f32.mrf.mxu1  ;;  %v1914_v15 = vadd.f32 %v1913_v0, %v4660_v31 }
 0x17d   : > { %5340 = vst [vmem:[#allocation22_spill] sm:$0xff] %v4734_v57  ;;  %v4737_v18 = vmax.f32 %v2005_v14, 0.0  ;;  %v2007_v23 = vadd.f32 %v2006_v6, %v1894_v36  ;;  %v3169_v37 = vpop.f32.mrf.mxu0 }
 0x17e   : > { %v2010_v42 = vpop.f32.mrf.mxu1 }
 0x17f   : > { %5341 = vst [vmem:[#allocation23_spill] sm:$0xff] %v4737_v18  ;;  %v4740_v51 = vmax.f32 %v2007_v23, 0.0  ;;  %v2011_v2 = vadd.f32 %v2010_v42, %v1898_v44  ;;  %v3170_v61 = vpop.f32.mrf.mxu0 }
 0x180   : > { %v2012_v12 = vpop.f32.mrf.mxu1  ;;  %v4744_v19 = vadd.f32 %v3170_v61, %v3169_v37 }
 0x181   : > { %5342 = vst [vmem:[#allocation24_spill] sm:$0xff] %v4740_v51  ;;  %v4742_v45 = vmax.f32 %v2011_v2, 0.0  ;;  %v2013_v55 = vadd.f32 %v2012_v12, %v1900_v53  ;;  %v3172_v28 = vpop.f32.mrf.mxu0 }
 0x182   : > { %v2014_v54 = vpop.f32.mrf.mxu1 }
 0x183   : > { %5343 = vst [vmem:[#allocation25_spill] sm:$0xff] %v4742_v45  ;;  %v4746_v46 = vmax.f32 %v2013_v55, 0.0  ;;  %v2015_v21 = vadd.f32 %v2014_v54, %v1902_v59  ;;  %v3173_v31 = vpop.f32.mrf.mxu0 }
 0x184   : > { %v2016_v33 = vpop.f32.mrf.mxu1  ;;  %v4750_v62 = vadd.f32 %v3173_v31, %v3172_v28 }
 0x185   : > { %5344 = vst [vmem:[#allocation26_spill] sm:$0xff] %v4746_v46  ;;  %v4748_v36 = vmax.f32 %v2015_v21, 0.0  ;;  %v2017_v50 = vadd.f32 %v2016_v33, %v1904_v34  ;;  %v3175_v5 = vpop.f32.mrf.mxu0 }
 0x186   : > { %v2020_v44 = vpop.f32.mrf.mxu1 }
 0x187   : > { %5345 = vst [vmem:[#allocation27_spill] sm:$0xff] %v4748_v36  ;;  %v4752_v24 = vmax.f32 %v2017_v50, 0.0  ;;  %v2021_v17 = vadd.f32 %v2020_v44, %v1908_v49  ;;  %v3176_v1 = vpop.f32.mrf.mxu0 }
 0x188   : > { %v2022_v53 = vpop.f32.mrf.mxu1  ;;  %v4756_v47 = vadd.f32 %v3176_v1, %v3175_v5 }
 0x189   : > { %5346 = vst [vmem:[#allocation28_spill] sm:$0xff] %v4752_v24  ;;  %v4754_v39 = vmax.f32 %v2021_v17, 0.0  ;;  %v2023_v7 = vadd.f32 %v2022_v53, %v1910_v38  ;;  %v3178_v52 = vpop.f32.mrf.mxu0 }
 0x18a   : > { %v2024_v59 = vpop.f32.mrf.mxu1 }
 0x18b   : > { %5347 = vst [vmem:[#allocation29_spill] sm:$0xff] %v4754_v39  ;;  %v4758_v14 = vmax.f32 %v2023_v7, 0.0  ;;  %v2025_v0 = vadd.f32 %v2024_v59, %v1912_v58  ;;  %v3179_v6 = vpop.f32.mrf.mxu0 }
 0x18c   : > { %v2026_v34 = vpop.f32.mrf.mxu1  ;;  %v4762_v37 = vadd.f32 %v3179_v6, %v3178_v52 }
 0x18d   : > { %5348 = vst [vmem:[#allocation30_spill] sm:$0xff] %v4758_v14  ;;  %v4760_v23 = vmax.f32 %v2025_v0, 0.0  ;;  %v2027_v42 = vadd.f32 %v2026_v34, %v1914_v15  ;;  %v3181_v2 = vpop.f32.mrf.mxu0  ;;  %v503_v0 = vsub.s32 2, %v4541_v8 }
 0x18e   : > { %v2030_v49 = vpop.f32.mrf.mxu1 }
 0x18f   : > { %5349 = vst [vmem:[#allocation31_spill] sm:$0xff] %v4760_v23  ;;  %v4764_v12 = vmax.f32 %v2027_v42, 0.0  ;;  %v2031_v38 = vadd.f32 %v2030_v49, %v4671_v20  ;;  %v3182_v55 = vpop.f32.mrf.mxu0 }
 0x190   : > { %v2032_v61 = vpop.f32.mrf.mxu1  ;;  %v4770_v58 = vadd.f32 %v3182_v55, %v3181_v2 }
 0x191   : > { %5350 = vst [vmem:[#allocation32_spill] sm:$0xff] %v4764_v12  ;;  %v4767_v54 = vmax.f32 %v2031_v38, 0.0  ;;  %v2033_v28 = vadd.f32 %v2032_v61, %v4674_v40  ;;  %v3184_v33 = vpop.f32.mrf.mxu0 }
 0x192   : > { %v2034_v21 = vpop.f32.mrf.mxu1 }
 0x193   : > { %5351 = vst [vmem:[#allocation33_spill] sm:$0xff] %v4767_v54  ;;  %v4772_v31 = vmax.f32 %v2033_v28, 0.0  ;;  %v2035_v15 = vadd.f32 %v2034_v21, %v4677_v48  ;;  %v3185_v44 = vpop.f32.mrf.mxu0 }
 0x194   : > { %v2036_v50 = vpop.f32.mrf.mxu1  ;;  %v4778_v17 = vadd.f32 %v3185_v44, %v3184_v33 }
 0x195   : > { %5352 = vst [vmem:[#allocation34_spill] sm:$0xff] %v4772_v31  ;;  %v4775_v5 = vmax.f32 %v2035_v15, 0.0  ;;  %v2037_v20 = vadd.f32 %v2036_v50, %v4680_v29  ;;  %v3187_v1 = vpop.f32.mrf.mxu0 }
 0x196   : > { %v2040_v53 = vpop.f32.mrf.mxu1 }
 0x197   : > { %5353 = vst [vmem:[#allocation35_spill] sm:$0xff] %v4775_v5  ;;  %v4780_v7 = vmax.f32 %v2037_v20, 0.0  ;;  %v2041_v40 = vadd.f32 %v2040_v53, %v4683_v26  ;;  %v3188_v52 = vpop.f32.mrf.mxu0  ;;  %v4793_v26 = vrot.slane %v4551_v16, %v503_v0 }
 0x198   : > { %v2042_v59 = vpop.f32.mrf.mxu1  ;;  %v4787_v6 = vadd.f32 %v3188_v52, %v3187_v1 }
 0x199   : > { %5354 = vst [vmem:[#allocation36_spill] sm:$0xff] %v4780_v7  ;;  %v4784_v34 = vmax.f32 %v2041_v40, 0.0  ;;  %v2043_v48 = vadd.f32 %v2042_v59, %v4686_v9  ;;  %v3190_v29 = vpop.f32.mrf.mxu0  ;;  %v2087_v52 = vadd.f32 %v4750_v62, %v4793_v26 }
 0x19a   : > { %v2044_v42 = vpop.f32.mrf.mxu1 }
 0x19b   : > { %5355 = vst [vmem:[#allocation37_spill] sm:$0xff] %v4784_v34  ;;  %v4789_v49 = vmax.f32 %v2043_v48, 0.0  ;;  %v2045_v2 = vadd.f32 %v2044_v42, %v4689_v63  ;;  %v3191_v61 = vpop.f32.mrf.mxu0  ;;  %v2084_v63 = vadd.f32 %v4744_v19, %v4793_v26 }
 0x19c   : > { %v2046_v38 = vpop.f32.mrf.mxu1  ;;  %v4798_v21 = vadd.f32 %v3191_v61, %v3190_v29  ;;  %v2092_v61 = vadd.f32 %v4756_v47, %v4793_v26 }
 0x19d   : > { %5356 = vst [vmem:[#allocation38_spill] sm:$0xff] %v4789_v49  ;;  %v4795_v55 = vmax.f32 %v2045_v2, 0.0  ;;  %v2047_v28 = vadd.f32 %v2046_v38, %v4692_v13  ;;  %v3193_v9 = vpop.f32.mrf.mxu0 }
 0x19e   : > { %v3233_v33 = vpop.f32.mrf.mxu1 }
 0x19f   : > { %5357 = vst [vmem:[#allocation39_spill] sm:$0xff] %v4795_v55  ;;  %v4800_v15 = vmax.f32 %v2047_v28, 0.0  ;;  %v3194_v50 = vpop.f32.mrf.mxu0 }
 0x1a0   : > { %v3234_v44 = vpop.f32.mrf.mxu1  ;;  %v4804_v20 = vadd.f32 %v3194_v50, %v3193_v9 }
 0x1a1   : > { %5358 = vst [vmem:[#allocation40_spill] sm:$0xff] %v4800_v15  ;;  %v3235_v53 = vadd.f32 %v3234_v44, %v3233_v33  ;;  %v3196_v16 = vpop.f32.mrf.mxu0 }
 0x1a2   : > { %v3236_v1 = vpop.f32.mrf.mxu1 }
 0x1a3   : > { %v4806_v40 = vadd.f32 %v3235_v53, %v2084_v63  ;;  %v3197_v59 = vpop.f32.mrf.mxu0  ;;  %v2095_v53 = vadd.f32 %v4762_v37, %v4793_v26 }
 0x1a4   : > { %v3237_v13 = vpop.f32.mrf.mxu1  ;;  %v4810_v0 = vadd.f32 %v3197_v59, %v3196_v16 }
 0x1a5   : > { %v3238_v48 = vadd.f32 %v3237_v13, %v3236_v1  ;;  %v3199_v42 = vpop.f32.mrf.mxu0 }
 0x1a6   : > { %v3239_v29 = vpop.f32.mrf.mxu1 }
 0x1a7   : > { %v4812_v2 = vadd.f32 %v3238_v48, %v2087_v52  ;;  %v3200_v19 = vpop.f32.mrf.mxu0 }
 0x1a8   : > { %v3240_v38 = vpop.f32.mrf.mxu1  ;;  %v4816_v28 = vadd.f32 %v3200_v19, %v3199_v42  ;;  %v2100_v42 = vadd.f32 %v4770_v58, %v4793_v26 }
 0x1a9   : > { %v3241_v9 = vadd.f32 %v3240_v38, %v3239_v29  ;;  %v3202_v33 = vpop.f32.mrf.mxu0 }
 0x1aa   : > { %v3242_v50 = vpop.f32.mrf.mxu1 }
 0x1ab   : > { %v4818_v44 = vadd.f32 %v3241_v9, %v2092_v61  ;;  %v3203_v62 = vpop.f32.mrf.mxu0 }
 0x1ac   : > { %v3243_v63 = vpop.f32.mrf.mxu1  ;;  %v4822_v16 = vadd.f32 %v3203_v62, %v3202_v33 }
 0x1ad   : > { %v3244_v1 = vadd.f32 %v3243_v63, %v3242_v50  ;;  %v3205_v59 = vpop.f32.mrf.mxu0  ;;  %v2103_v50 = vadd.f32 %v4778_v17, %v4793_v26 }
 0x1ae   : > { %v3245_v13 = vpop.f32.mrf.mxu1 }
 0x1af   : > { %v4824_v52 = vadd.f32 %v3244_v1, %v2095_v53  ;;  %v3206_v47 = vpop.f32.mrf.mxu0 }
 0x1b0   : > { %v3246_v48 = vpop.f32.mrf.mxu1  ;;  %v4828_v29 = vadd.f32 %v3206_v47, %v3205_v59 }
 0x1b1   : > { %v3247_v19 = vadd.f32 %v3246_v48, %v3245_v13  ;;  %v3208_v38 = vpop.f32.mrf.mxu0  ;;  %v2108_v13 = vadd.f32 %v4787_v6, %v4793_v26 }
 0x1b2   : > { %v3248_v61 = vpop.f32.mrf.mxu1 }
 0x1b3   : > { %v4830_v9 = vadd.f32 %v3247_v19, %v2100_v42  ;;  %v3209_v37 = vpop.f32.mrf.mxu0 }
 0x1b4   : > { %v3249_v33 = vpop.f32.mrf.mxu1  ;;  %v4834_v62 = vadd.f32 %v3209_v37, %v3208_v38 }
 0x1b5   : > { %v3250_v63 = vadd.f32 %v3249_v33, %v3248_v61  ;;  %v3211_v53 = vpop.f32.mrf.mxu0 }
 0x1b6   : > { %v3251_v1 = vpop.f32.mrf.mxu1 }
 0x1b7   : > { %v4836_v4 = vadd.f32 %v3250_v63, %v2103_v50  ;;  %v3212_v58 = vpop.f32.mrf.mxu0 }
 0x1b8   : > { %v3252_v59 = vpop.f32.mrf.mxu1  ;;  %v4840_v47 = vadd.f32 %v3212_v58, %v3211_v53 }
 0x1b9   : > { %v3253_v48 = vadd.f32 %v3252_v59, %v3251_v1  ;;  %v4842_v42 = vpop.f32.mrf.mxu0 }
 0x1ba   : > { %v3254_v19 = vpop.f32.mrf.mxu1 }
 0x1bb   : > { %v4844_v8 = vadd.f32 %v3253_v48, %v2108_v13  ;;  %v4846_v17 = vpop.f32.mrf.mxu0 }
 0x1bc   : > { %v3255_v38 = vpop.f32.mrf.mxu1 }
 0x1bd   : > { %v3297_v37 = vpop.f32.mrf.mxu0 }
 0x1be   : > { %v4848_v61 = vpop.f32.mrf.mxu1 }
 0x1bf   : > { %v3298_v50 = vpop.f32.mrf.mxu0 }
 0x1c0   : > { %v4850_v33 = vpop.f32.mrf.mxu1  ;;  %v3299_v10 = vadd.f32 %v3298_v50, %v3297_v37  ;;  %v3256_v50 = vadd.f32 %v3255_v38, %v3254_v19 }
 0x1c1   : > { %v3300_v6 = vpop.f32.mrf.mxu0 }
 0x1c2   : > { %v4852_v63 = vpop.f32.mrf.mxu1  ;;  %v2278_v27 = vadd.f32 %v3299_v10, %v4806_v40 }
 0x1c3   : > { %v3301_v1 = vpop.f32.mrf.mxu0 }
 0x1c4   : > { %v4854_v53 = vpop.f32.mrf.mxu1  ;;  %v3302_v56 = vadd.f32 %v3301_v1, %v3300_v6 }
 0x1c5   : > { %v3303_v59 = vpop.f32.mrf.mxu0 }
 0x1c6   : > { %v3263_v58 = vpop.f32.mrf.mxu1 }
 0x1c7   : > { %v3304_v13 = vpop.f32.mrf.mxu0 }
 0x1c8   : > { %v3264_v15 = vpop.f32.mrf.mxu1  ;;  %v3305_v51 = vadd.f32 %v3304_v13, %v3303_v59 }
 0x1c9   : > { %v3306_v55 = vpop.f32.mrf.mxu0 }
 0x1ca   : > { %v4856_v48 = vpop.f32.mrf.mxu1  ;;  %v2286_v3 = vadd.f32 %v3305_v51, %v4818_v44  ;;  %v2281_v44 = vadd.f32 %v3302_v56, %v4812_v2 }
 0x1cb   : > { %v3307_v34 = vpop.f32.mrf.mxu0 }
 0x1cc   : > { %v4858_v49 = vpop.f32.mrf.mxu1  ;;  %v3308_v30 = vadd.f32 %v3307_v34, %v3306_v55 }
 0x1cd   : > { %v3309_v5 = vpop.f32.mrf.mxu0 }
 0x1ce   : > { %v4860_v7 = vpop.f32.mrf.mxu1  ;;  %v2289_v37 = vadd.f32 %v3308_v30, %v4824_v52 }
 0x1cf   : > { %v3310_v54 = vpop.f32.mrf.mxu0 }
 0x1d0   : > { %v4862_v31 = vpop.f32.mrf.mxu1  ;;  %v3311_v34 = vadd.f32 %v3310_v54, %v3309_v5 }
 0x1d1   : > { %v3312_v23 = vpop.f32.mrf.mxu0 }
 0x1d2   : > { %v4864_v12 = vpop.f32.mrf.mxu1  ;;  %v2294_v56 = vadd.f32 %v3311_v34, %v4830_v9  ;;  %v3268_v9 = vadd.f32 %v4858_v49, %v4856_v48 }
 0x1d3   : > { %v3313_v39 = vpop.f32.mrf.mxu0 }
 0x1d4   : > { %v4866_v14 = vpop.f32.mrf.mxu1  ;;  %v3314_v5 = vadd.f32 %v3313_v39, %v3312_v23  ;;  %v2116_v39 = vadd.f32 %v4804_v20, %v4793_v26 }
 0x1d5   : > { %v3315_v36 = vpop.f32.mrf.mxu0 }
 0x1d6   : > { %v4868_v24 = vpop.f32.mrf.mxu1 }
 0x1d7   : > { %v3316_v45 = vpop.f32.mrf.mxu0 }
 0x1d8   : > { %v4870_v46 = vpop.f32.mrf.mxu1  ;;  %v3317_v11 = vadd.f32 %v3316_v45, %v3315_v36  ;;  %v3265_v36 = vadd.f32 %v3264_v15, %v3263_v58  ;;  %v2127_v58 = vadd.f32 %v4822_v16, %v4793_v26 }
 0x1d9   : > { %v3318_v57 = vpop.f32.mrf.mxu0 }
 0x1da   : > { %v4872_v18 = vpop.f32.mrf.mxu1 }
 0x1db   : > { %5359 = vst [vmem:[#allocation41_spill] sm:$0xff] %v4872_v18  ;;  %v3319_v22 = vpop.f32.mrf.mxu0 }
 0x1dc   : > { %v4874_v35 = vpop.f32.mrf.mxu1  ;;  %v3320_v45 = vadd.f32 %v3319_v22, %v3318_v57  ;;  %v3259_v22 = vadd.f32 %v4850_v33, %v4848_v61  ;;  %v2297_v33 = vadd.f32 %v3314_v5, %v4836_v4 }
 0x1dd   : > { %5360 = vst [vmem:[#allocation42_spill] sm:$0xff] %v4874_v35  ;;  %v3321_v60 = vpop.f32.mrf.mxu0 }
 0x1de   : > { %v3358_v25 = vpop.f32.mrf.mxu1 }
 0x1df   : > { %v2383_v43 = vadd.f32 %v3358_v25, %v2286_v3  ;;  %v3322_v41 = vpop.f32.mrf.mxu0  ;;  %v2111_v25 = vadd.f32 %v4798_v21, %v4793_v26  ;;  %v2124_v21 = vadd.f32 %v4816_v28, %v4793_v26 }
 0x1e0   : > { %v2374_v32 = vpop.f32.mrf.mxu1  ;;  %v3323_v28 = vadd.f32 %v3322_v41, %v3321_v60  ;;  %v2119_v41 = vadd.f32 %v4810_v0, %v4793_v26  ;;  %v2224_v60 = vadd.f32 %v3268_v9, %v2127_v58  ;;  %v2132_v0 = vadd.f32 %v4828_v29, %v4793_v26 }
 0x1e1   : > { %v4878_v59 = vmax.f32 %v2383_v43, 0.0  ;;  %v2375_v13 = vadd.f32 %v2374_v32, %v2278_v27  ;;  %v3324_v35 = vpop.f32.mrf.mxu0  ;;  %v2302_v27 = vadd.f32 %v3317_v11, %v4844_v8  ;;  %v2208_v30 = vadd.f32 %v3256_v50, %v2111_v25 }
 0x1e2   : > { %v3359_v18 = vpop.f32.mrf.mxu1  ;;  %v2221_v23 = vadd.f32 %v3265_v36, %v2124_v21  ;;  %v3274_v21 = vadd.f32 %v4866_v14, %v4864_v12  ;;  %v2135_v29 = vadd.f32 %v4834_v62, %v4793_v26  ;;  %v3216_v14 = vadd.f32 %v4846_v17, %v4842_v42 }
 0x1e3   : > { %v4881_v55 = vmax.f32 %v2375_v13, 0.0  ;;  %v2386_v51 = vadd.f32 %v3359_v18, %v2289_v37  ;;  %v3325_v3 = vpop.f32.mrf.mxu0  ;;  %v2305_v15 = vadd.f32 %v3320_v45, %v2208_v30  ;;  %v2213_v13 = vadd.f32 %v3259_v22, %v2116_v39 }
 0x1e4   : > { %v2377_v10 = vpop.f32.mrf.mxu1  ;;  %v3262_v37 = vadd.f32 %v4854_v53, %v4852_v63  ;;  %v3326_v25 = vadd.f32 %v3325_v3, %v3324_v35 }
 0x1e5   : > { %v4886_v43 = vmax.f32 %v2386_v51, 0.0  ;;  %v2378_v32 = vadd.f32 %v2377_v10, %v2281_v44  ;;  %v3327_v40 = vpop.f32.mrf.mxu0  ;;  %v2310_v45 = vadd.f32 %v3323_v28, %v2213_v13  ;;  %v5362_v28 = vld [vmem:[#allocation41_spill] sm:$0xff] }
 0x1e6   : > { %v3362_v54 = vpop.f32.mrf.mxu1 }
 0x1e7   : > { %v4889_v52 = vmax.f32 %v2378_v32, 0.0  ;;  %v2399_v18 = vadd.f32 %v3362_v54, %v2302_v27  ;;  %v3328_v57 = vpop.f32.mrf.mxu0  ;;  %v2216_v32 = vadd.f32 %v3262_v37, %v2119_v41  ;;  %v3271_v27 = vadd.f32 %v4862_v31, %v4860_v7 }
 0x1e8   : > { %v2390_v2 = vpop.f32.mrf.mxu1  ;;  %v3329_v8 = vadd.f32 %v3328_v57, %v3327_v40  ;;  %v3277_v7 = vadd.f32 %v4870_v46, %v4868_v24  ;;  %v2143_v37 = vadd.f32 %v3216_v14, %v4793_v26 }
 0x1e9   : > { %v4896_v19 = vmax.f32 %v2399_v18, 0.0  ;;  %v2391_v11 = vadd.f32 %v2390_v2, %v2294_v56  ;;  %v3330_v38 = vpop.f32.mrf.mxu0  ;;  %v2313_v56 = vadd.f32 %v3326_v25, %v2216_v32  ;;  %v2229_v31 = vadd.f32 %v3271_v27, %v2132_v0 }
 0x1ea   : > { %v3363_v6 = vpop.f32.mrf.mxu1  ;;  %v2318_v51 = vadd.f32 %v3329_v8, %v2221_v23 }
 0x1eb   : > { %v4902_v1 = vmax.f32 %v2391_v11, 0.0  ;;  %v2402_v61 = vadd.f32 %v3363_v6, %v2305_v15  ;;  %v3331_v20 = vpop.f32.mrf.mxu0  ;;  %v2140_v11 = vadd.f32 %v4840_v47, %v4793_v26 }
 0x1ec   : > { %v2393_v50 = vpop.f32.mrf.mxu1  ;;  %v3332_v49 = vadd.f32 %v3331_v20, %v3330_v38  ;;  %v2232_v38 = vadd.f32 %v3274_v21, %v2135_v29 }
 0x1ed   : > { %v4909_v34 = vmax.f32 %v2402_v61, 0.0  ;;  %v2394_v48 = vadd.f32 %v2393_v50, %v2297_v33  ;;  %v3333_v44 = vpop.f32.mrf.mxu0  ;;  %v2237_v6 = vadd.f32 %v3277_v7, %v2140_v11  ;;  %v5363_v61 = vld [vmem:[#allocation42_spill] sm:$0xff] }
 0x1ee   : > { %v3366_v4 = vpop.f32.mrf.mxu1  ;;  %v2321_v40 = vadd.f32 %v3332_v49, %v2224_v60  ;;  %v3280_v33 = vadd.f32 %v5363_v61, %v5362_v28 }
 0x1ef   : > { %v4913_v10 = vmax.f32 %v2394_v48, 0.0  ;;  %v2415_v16 = vadd.f32 %v3366_v4, %v2318_v51  ;;  %v3334_v63 = vpop.f32.mrf.mxu0 }
 0x1f0   : > { %v2406_v53 = vpop.f32.mrf.mxu1  ;;  %v3335_v35 = vadd.f32 %v3334_v63, %v3333_v44  ;;  %v2240_v48 = vadd.f32 %v3280_v33, %v2143_v37 }
 0x1f1   : > { %v4917_v30 = vmax.f32 %v2415_v16, 0.0  ;;  %v2407_v36 = vadd.f32 %v2406_v53, %v2310_v45  ;;  %v3336_v54 = vpop.f32.mrf.mxu0 }
 0x1f2   : > { %v3367_v5 = vpop.f32.mrf.mxu1  ;;  %v2326_v9 = vadd.f32 %v3335_v35, %v2229_v31 }
 0x1f3   : > { %5361 = vst [vmem:[#allocation43_spill] sm:$0xff] %v4917_v30  ;;  %v4921_v3 = vmax.f32 %v2407_v36, 0.0  ;;  %v2418_v18 = vadd.f32 %v3367_v5, %v2321_v40  ;;  %v3337_v22 = vpop.f32.mrf.mxu0 }
 0x1f4   : > { %v2409_v57 = vpop.f32.mrf.mxu1  ;;  %v3338_v12 = vadd.f32 %v3337_v22, %v3336_v54 }
 0x1f5   : > { %v4927_v2 = vmax.f32 %v2418_v18, 0.0  ;;  %v2410_v8 = vadd.f32 %v2409_v57, %v2313_v56  ;;  %v3339_v15 = vpop.f32.mrf.mxu0 }
 0x1f6   : > { %v3370_v39 = vpop.f32.mrf.mxu1  ;;  %v2329_v42 = vadd.f32 %v3338_v12, %v2232_v38 }
 0x1f7   : > { %v4935_v23 = vmax.f32 %v2410_v8, 0.0  ;;  %v3340_v46 = vpop.f32.mrf.mxu0 }
 0x1f8   : > { %v2422_v24 = vpop.f32.mrf.mxu1  ;;  %v3341_v62 = vadd.f32 %v3340_v46, %v3339_v15 }
 0x1f9   : > { %v2423_v58 = vadd.f32 %v2422_v24, %v2326_v9  ;;  %v3342_v13 = vpop.f32.mrf.mxu0 }
 0x1fa   : > { %v3371_v47 = vpop.f32.mrf.mxu1  ;;  %v2334_v20 = vadd.f32 %v3341_v62, %v2237_v6 }
 0x1fb   : > { %v4940_v50 = vmax.f32 %v2423_v58, 0.0  ;;  %v3343_v17 = vpop.f32.mrf.mxu0 }
 0x1fc   : > { %v2425_v49 = vpop.f32.mrf.mxu1  ;;  %v2431_v51 = vadd.f32 %v3370_v39, %v2334_v20  ;;  %v3344_v41 = vadd.f32 %v3343_v17, %v3342_v13 }
 0x1fd   : > { %v2426_v60 = vadd.f32 %v2425_v49, %v2329_v42 }
 0x1fe   : > { %v4942_v44 = vmax.f32 %v2431_v51, 0.0  ;;  %v2337_v4 = vadd.f32 %v3344_v41, %v2240_v48 }
 0x1ff   : > { %v4944_v25 = vmax.f32 %v2426_v60, 0.0 }
 0x200   : > { %5364 = vst [vmem:[#allocation41_spill] sm:$0xff] %v4942_v44  ;;  %v2434_v16 = vadd.f32 %v3371_v47, %v2337_v4  ;;  %2488 = sbr.rel (%p3146_p4) target bundleno = 521 (0x209), region = 36 }
 0x201   : > { %5365 = vst [vmem:[#allocation42_spill] sm:$0xff] %v4944_v25 }
 0x202   : > { %v4946_v45 = vmax.f32 %v2434_v16, 0.0 }
 0x204   : > { %5366 = vst [vmem:[#allocation44_spill] sm:$0xff] %v4946_v45 }
 0x205   : > { %v5367_v26 = vlaneseq  ;;  %v3773_v32 = vmov 0.0  }
 0x207   : > { %vm2491_vm1 = vcmp.lt.s32.totalorder %v5367_v26, 300 }
 0x208   : > { %2493 = vst.msk [vmem:[#allocation2] sm:$0x7] %vm2491_vm1, %v3773_v32  ;;  %2494 = vst.msk [vmem:[#allocation4] sm:$0x7] %vm2491_vm1, %v3773_v32 }
 0x209 PF: > { %v5368_v63 = vld [vmem:[#allocation9_spill] sm:$0xff]  ;;  %v5369_v53 = vld [vmem:[#allocation11_spill] sm:$0xff]  ;;  %v5370_v36 = vld [vmem:[#allocation10_spill] sm:$0xff]  ;;  %vm2538_vm2 = vcmask 359424   ;;  %p3414_p5 = scmp.eq.s32.totalorder %s3813_s19, 1 }
 0x20a   : > { %v2496_v27 = vadd.f32 %v5369_v53, %v5368_v63  ;;  %v5371_v40 = vld [vmem:[#allocation12_spill] sm:$0xff]  ;;  %2766 = vst [vmem:[%s3863_s28] sm:$0xff] %v5368_v63  ;;  %2767 = vst [vmem:[%s3863_s28 + $0x8] sm:$0xff] %v5370_v36  ;;  %v5372_v54 = vld [vmem:[#allocation13_spill] sm:$0xff]  ;;  %v2539_v47 = vsel %vm2538_vm2, %v4881_v55, 0.0  ;;  %v2540_v37 = vsel %vm2538_vm2, %v4889_v52, 0.0  ;;  %v2542_v20 = vsel %vm2538_vm2, %v4878_v59, 0.0 }
 0x20b   : > { %v2517_v0 = vadd.f32 %v5371_v40, %v5370_v36  ;;  %2769 = vst [vmem:[%s3863_s28 + $0x18] sm:$0xff] %v5369_v53  ;;  %2770 = vst [vmem:[%s3863_s28 + $0x20] sm:$0xff] %v5371_v40  ;;  %v5373_v5 = vld [vmem:[#allocation14_spill] sm:$0xff]  ;;  %v5374_v35 = vld [vmem:[#allocation15_spill] sm:$0xff]  ;;  %v2541_v49 = vadd.f32 %v2540_v37, %v2539_v47  ;;  %v2544_v48 = vsel %vm2538_vm2, %v4886_v43, 0.0  ;;  %v2546_v4 = vsel %vm2538_vm2, %v4902_v1, 0.0 }
 0x20c   : > { %2772 = vst [vmem:[%s3863_s28 + $0x30] sm:$0xff] %v5372_v54  ;;  %2773 = vst [vmem:[%s3863_s28 + $0x38] sm:$0xff] %v5373_v5  ;;  %v5375_v18 = vld [vmem:[#allocation16_spill] sm:$0xff]  ;;  %v5376_v56 = vld [vmem:[#allocation17_spill] sm:$0xff]  ;;  %v2497_v42 = vadd.f32 %v2496_v27, %v5372_v54  ;;  %v2548_v27 = vsel %vm2538_vm2, %v4913_v10, 0.0 }
 0x20d   : > { %2775 = vst [vmem:[%s3863_s28 + $0x48] sm:$0xff] %v5374_v35  ;;  %2776 = vst [vmem:[%s3863_s28 + $0x50] sm:$0xff] %v5375_v18  ;;  %v5377_v21 = vld [vmem:[#allocation18_spill] sm:$0xff]  ;;  %v5378_v22 = vld [vmem:[#allocation19_spill] sm:$0xff]  ;;  %v2518_v17 = vadd.f32 %v2517_v0, %v5373_v5  ;;  %v2543_v60 = vadd.f32 %v2542_v20, %v2541_v49 }
 0x20e   : > { %2778 = vst [vmem:[%s3863_s28 + $0x60] sm:$0xff] %v5376_v56  ;;  %2779 = vst [vmem:[%s3863_s28 + $0x68] sm:$0xff] %v5377_v21  ;;  %v5379_v57 = vld [vmem:[#allocation20_spill] sm:$0xff]  ;;  %v5380_v31 = vld [vmem:[#allocation21_spill] sm:$0xff]  ;;  %v2498_v51 = vadd.f32 %v2497_v42, %v5374_v35  ;;  %v2550_v42 = vsel %vm2538_vm2, %v4896_v19, 0.0 }
 0x20f   : > { %2781 = vst [vmem:[%s3863_s28 + $0x78] sm:$0xff] %v5378_v22  ;;  %2782 = vst [vmem:[%s3863_s28 + $0x80] sm:$0xff] %v5379_v57  ;;  %v5381_v7 = vld [vmem:[#allocation22_spill] sm:$0xff]  ;;  %v5382_v8 = vld [vmem:[#allocation23_spill] sm:$0xff]  ;;  %v2519_v41 = vadd.f32 %v2518_v17, %v5375_v18  ;;  %v2545_v32 = vadd.f32 %v2544_v48, %v2543_v60  ;;  %v3774_v48 = vmov 1966171168  }
 0x210   : > { %2784 = vst [vmem:[%s3863_s28 + $0x90] sm:$0xff] %v5380_v31  ;;  %2785 = vst [vmem:[%s3863_s28 + $0x98] sm:$0xff] %v5381_v7  ;;  %v5383_v29 = vld [vmem:[#allocation24_spill] sm:$0xff]  ;;  %v5384_v11 = vld [vmem:[#allocation25_spill] sm:$0xff]  ;;  %v2499_v16 = vadd.f32 %v2498_v51, %v5376_v56  ;;  %v2552_v51 = vsel %vm2538_vm2, %v4909_v34, 0.0 }
 0x211   : > { %2787 = vst [vmem:[%s3863_s28 + $0xa8] sm:$0xff] %v5382_v8  ;;  %2788 = vst [vmem:[%s3863_s28 + $0xb0] sm:$0xff] %v5383_v29  ;;  %v5385_v15 = vld [vmem:[#allocation26_spill] sm:$0xff]  ;;  %v5386_v39 = vld [vmem:[#allocation27_spill] sm:$0xff]  ;;  %v2520_v26 = vadd.f32 %v2519_v41, %v5377_v21  ;;  %v2547_v37 = vadd.f32 %v2546_v4, %v2545_v32  ;;  %v2581_v41 = vunpack.c.l.s4 %v3774_v48  ;;  %v2554_v4 = vsel %vm2538_vm2, %v4921_v3, 0.0 }
 0x212   : > { %2790 = vst [vmem:[%s3863_s28 + $0xc0] sm:$0xff] %v5384_v11  ;;  %2791 = vst [vmem:[%s3863_s28 + $0xc8] sm:$0xff] %v5385_v15  ;;  %v5387_v14 = vld [vmem:[#allocation28_spill] sm:$0xff]  ;;  %v5388_v12 = vld [vmem:[#allocation29_spill] sm:$0xff]  ;;  %v2500_v0 = vadd.f32 %v2499_v16, %v5378_v22  ;;  %v2558_v32 = vsel %vm2538_vm2, %v4917_v30, 0.0 }
 0x213   : > { %2793 = vst [vmem:[%s3863_s28 + $0xd8] sm:$0xff] %v5386_v39  ;;  %2794 = vst [vmem:[%s3863_s28 + $0xe0] sm:$0xff] %v5387_v14  ;;  %v5389_v9 = vld [vmem:[#allocation30_spill] sm:$0xff]  ;;  %v5390_v38 = vld [vmem:[#allocation31_spill] sm:$0xff]  ;;  %v2521_v47 = vadd.f32 %v2520_v26, %v5379_v57  ;;  %v2549_v49 = vadd.f32 %v2548_v27, %v2547_v37  ;;  %v2556_v26 = vsel %vm2538_vm2, %v4935_v23, 0.0  ;;  %v2560_v37 = vsel %vm2538_vm2, %v4927_v2, 0.0 }
 0x214   : > { %2796 = vst [vmem:[%s3863_s28 + $0xf0] sm:$0xff] %v5388_v12  ;;  %2797 = vst [vmem:[%s3863_s28 + $0xf8] sm:$0xff] %v5389_v9  ;;  %v5391_v46 = vld [vmem:[#allocation32_spill] sm:$0xff]  ;;  %v5392_v24 = vld [vmem:[#allocation33_spill] sm:$0xff]  ;;  %v2501_v20 = vadd.f32 %v2500_v0, %v5380_v31 }
 0x215   : > { %2799 = vst [vmem:[%s3863_s28 + $0x108] sm:$0xff] %v5390_v38  ;;  %2800 = vst [vmem:[%s3863_s28 + $0x110] sm:$0xff] %v5391_v46  ;;  %v5393_v6 = vld [vmem:[#allocation34_spill] sm:$0xff]  ;;  %v5394_v28 = vld [vmem:[#allocation35_spill] sm:$0xff]  ;;  %v2522_v17 = vadd.f32 %v2521_v47, %v5381_v7 }
 0x216   : > { %2802 = vst [vmem:[%s3863_s28 + $0x120] sm:$0xff] %v5392_v24  ;;  %2803 = vst [vmem:[%s3863_s28 + $0x128] sm:$0xff] %v5393_v6  ;;  %v5395_v61 = vld [vmem:[#allocation36_spill] sm:$0xff]  ;;  %v5396_v33 = vld [vmem:[#allocation37_spill] sm:$0xff]  ;;  %v2502_v60 = vadd.f32 %v2501_v20, %v5382_v8  ;;  %v2564_v20 = vsel %vm2538_vm2, %v4944_v25, 0.0 }
 0x217   : > { %2805 = vst [vmem:[%s3863_s28 + $0x138] sm:$0xff] %v5394_v28  ;;  %2806 = vst [vmem:[%s3863_s28 + $0x140] sm:$0xff] %v5395_v61  ;;  %v5397_v62 = vld [vmem:[#allocation38_spill] sm:$0xff]  ;;  %v5398_v58 = vld [vmem:[#allocation39_spill] sm:$0xff]  ;;  %v2523_v16 = vadd.f32 %v2522_v17, %v5383_v29  ;;  %v2566_v17 = vsel %vm2538_vm2, %v4942_v44, 0.0 }
 0x218   : > { %2808 = vst [vmem:[%s3863_s28 + $0x150] sm:$0xff] %v5396_v33  ;;  %2809 = vst [vmem:[%s3863_s28 + $0x158] sm:$0xff] %v5397_v62  ;;  %v5399_v13 = vld [vmem:[#allocation40_spill] sm:$0xff]  ;;  %v2503_v27 = vadd.f32 %v2502_v60, %v5384_v11 }
 0x219   : > { %2811 = vst [vmem:[%s3863_s28 + $0x168] sm:$0xff] %v5398_v58  ;;  %2812 = vst [vmem:[%s3863_s28 + $0x170] sm:$0xff] %v5399_v13  ;;  %v2551_v13 = vadd.f32 %v2550_v42, %v2549_v49  ;;  %v2524_v0 = vadd.f32 %v2523_v16, %v5385_v15  ;;  %v2562_v42 = vsel %vm2538_vm2, %v4940_v50, 0.0  ;;  %v2582_v49 = vunpack.c.0.s8 %v2581_v41 }
 0x21a   : > { %2768 = vst.msk [vmem:[%s3863_s28 + $0x10] sm:$0xff] %vm2538_vm2, %v4881_v55  ;;  %2771 = vst.msk [vmem:[%s3863_s28 + $0x28] sm:$0xff] %vm2538_vm2, %v4889_v52  ;;  %v2504_v48 = vadd.f32 %v2503_v27, %v5386_v39  ;;  %v2611_v16 = vmul.f32 %v5370_v36, %v5370_v36  ;;  %v2613_v41 = vmul.f32 %v5369_v53, %v5369_v53 }
 0x21b   : > { %2774 = vst.msk [vmem:[%s3863_s28 + $0x40] sm:$0xff] %vm2538_vm2, %v4878_v59  ;;  %2777 = vst.msk [vmem:[%s3863_s28 + $0x58] sm:$0xff] %vm2538_vm2, %v4886_v43  ;;  %v2553_v47 = vadd.f32 %v2552_v51, %v2551_v13  ;;  %v2525_v60 = vadd.f32 %v2524_v0, %v5387_v14  ;;  %v2568_v13 = vsel %vm2538_vm2, %v4946_v45, 0.0  ;;  %v2610_v51 = vmul.f32 %v5368_v63, %v5368_v63 }
 0x21c   : > { %2780 = vst.msk [vmem:[%s3863_s28 + $0x70] sm:$0xff] %vm2538_vm2, %v4902_v1  ;;  %2783 = vst.msk [vmem:[%s3863_s28 + $0x88] sm:$0xff] %vm2538_vm2, %v4913_v10  ;;  %v2505_v27 = vadd.f32 %v2504_v48, %v5388_v12  ;;  %v2615_v63 = vmul.f32 %v4889_v52, %v4889_v52  ;;  %v2617_v53 = vmul.f32 %v5373_v5, %v5373_v5 }
 0x21d   : > { %2786 = vst.msk [vmem:[%s3863_s28 + $0xa0] sm:$0xff] %vm2538_vm2, %v4896_v19  ;;  %2789 = vst.msk [vmem:[%s3863_s28 + $0xb8] sm:$0xff] %vm2538_vm2, %v4909_v34  ;;  %v2526_v0 = vadd.f32 %v2525_v60, %v5389_v9  ;;  %v2620_v52 = vmul.f32 %v5375_v18, %v5375_v18  ;;  %v2622_v5 = vmul.f32 %v5376_v56, %v5376_v56 }
 0x21e   : > { %2792 = vst.msk [vmem:[%s3863_s28 + $0xd0] sm:$0xff] %vm2538_vm2, %v4921_v3  ;;  %2795 = vst.msk [vmem:[%s3863_s28 + $0xe8] sm:$0xff] %vm2538_vm2, %v4935_v23  ;;  %v2506_v36 = vadd.f32 %v2505_v27, %v5390_v38  ;;  %v2625_v18 = vmul.f32 %v5378_v22, %v5378_v22  ;;  %v2627_v56 = vmul.f32 %v4913_v10, %v4913_v10 }
 0x21f   : > { %2798 = vst.msk [vmem:[%s3863_s28 + $0x100] sm:$0xff] %vm2538_vm2, %v4917_v30  ;;  %2801 = vst.msk [vmem:[%s3863_s28 + $0x118] sm:$0xff] %vm2538_vm2, %v4927_v2  ;;  %v2555_v30 = vadd.f32 %v2554_v4, %v2553_v47  ;;  %v2614_v47 = vmul.f32 %v5371_v40, %v5371_v40  ;;  %v2527_v48 = vadd.f32 %v2526_v0, %v5391_v46 }
 0x220   : > { %2804 = vst.msk [vmem:[%s3863_s28 + $0x130] sm:$0xff] %vm2538_vm2, %v4940_v50  ;;  %2807 = vst.msk [vmem:[%s3863_s28 + $0x148] sm:$0xff] %vm2538_vm2, %v4944_v25  ;;  %v2612_v25 = vmul.f32 %v4881_v55, %v4881_v55  ;;  %v2616_v55 = vmul.f32 %v5372_v54, %v5372_v54  ;;  %v2618_v40 = vmul.f32 %v4878_v59, %v4878_v59 }
 0x221   : > { %2810 = vst.msk [vmem:[%s3863_s28 + $0x160] sm:$0xff] %vm2538_vm2, %v4942_v44  ;;  %2813 = vst.msk [vmem:[%s3863_s28 + $0x178] sm:$0xff] %vm2538_vm2, %v4946_v45  ;;  %v2557_v4 = vadd.f32 %v2556_v26, %v2555_v30  ;;  %v5400_v45 = vld [vmem:[#allocation8_spill] sm:$0xff]  ;;  %v2621_v54 = vmul.f32 %v4886_v43, %v4886_v43  ;;  %v2507_v26 = vadd.f32 %v2506_v36, %v5392_v24  ;;  %s3775_s28 = smov [#allocation2]  }
 0x222   : > { %v5127_v44 = vsub.s32 %v2582_v49, %v5400_v45  ;;  %v2619_v45 = vmul.f32 %v5374_v35, %v5374_v35  ;;  %v2528_v49 = vadd.f32 %v2527_v48, %v5393_v6  ;;  %v2623_v59 = vmul.f32 %v5377_v21, %v5377_v21  ;;  %v5401_v48 = vld [vmem:[#allocation40_spill] sm:$0xff]  ;;  %s2831_s27 = sshll.u32 %s3775_s28, 4  ;;  %s2832_s27 = int_to_ptr.vmem [resolvable:$true] %s2831_s27 }
 0x223   : > { %v2559_v30 = vadd.f32 %v2558_v32, %v2557_v4  ;;  %v2624_v35 = vmul.f32 %v4902_v1, %v4902_v1  ;;  %v2626_v43 = vmul.f32 %v5379_v57, %v5379_v57  ;;  %v2508_v60 = vadd.f32 %v2507_v26, %v5394_v28  ;;  %s3708_s29 = scalar_lea.vmem %s2832_s27, 48  ;;  %s3714_s30 = scalar_lea.vmem %s2832_s27, 64 }
 0x224   : > { %v2529_v27 = vadd.f32 %v2528_v49, %v5395_v61  ;;  %v2628_v21 = vmul.f32 %v5380_v31, %v5380_v31  ;;  %v2629_v1 = vmul.f32 %v5381_v7, %v5381_v7  ;;  %v2630_v22 = vmul.f32 %v4896_v19, %v4896_v19  ;;  %p3709_p6 = scmp.ne.s32.totalorder %s2832_s27, %s3708_s29  ;;  %p3715_p9 = scmp.lt.s32.totalorder %s2832_s27, %s2832_s27 }
 0x225   : > { %v2561_v32 = vadd.f32 %v2560_v37, %v2559_v30  ;;  %v2631_v57 = vmul.f32 %v5382_v8, %v5382_v8  ;;  %v2632_v10 = vmul.f32 %v5383_v29, %v5383_v29  ;;  %v2509_v0 = vadd.f32 %v2508_v60, %v5396_v33  ;;  %p3716_p10 = scmp.lt.s32.totalorder %s3714_s30, %s3708_s29 }
 0x226   : > { %v2530_v4 = vadd.f32 %v2529_v27, %v5397_v62  ;;  %v2633_v31 = vmul.f32 %v4909_v34, %v4909_v34  ;;  %v2634_v7 = vmul.f32 %v5384_v11, %v5384_v11  ;;  %v2635_v19 = vmul.f32 %v5385_v15, %v5385_v15  ;;  %p3710_p7 = pnand %p3709_p6, %p3414_p5 }
 0x227   : > { %v2563_v37 = vadd.f32 %v2562_v42, %v2561_v32  ;;  %v2636_v8 = vmul.f32 %v4921_v3, %v4921_v3  ;;  %v2658_v36 = vadd.f32 %v2613_v41, %v2610_v51  ;;  %v2510_v29 = vadd.f32 %v2509_v0, %v5398_v58  ;;  %p3717_p11 = por %p3716_p10, %p3715_p9 }
 0x228   : > { %v2531_v30 = vadd.f32 %v2530_v4, %v5401_v48  ;;  %v2679_v49 = vadd.f32 %v2614_v47, %v2611_v16  ;;  %v2700_v32 = vsel %vm2538_vm2, %v2612_v25, 0.0  ;;  %v2701_v34 = vsel %vm2538_vm2, %v2615_v63, 0.0  ;;  %p3711_p8 = pneg %p3710_p7 }
 0x229   : > { %v2565_v42 = vadd.f32 %v2564_v20, %v2563_v37  ;;  %v2659_v20 = vadd.f32 %v2658_v36, %v2616_v55  ;;  %v2703_v11 = vsel %vm2538_vm2, %v2618_v40, 0.0  ;;  %v2511_v60 = vrot.slane %v2510_v29, 4 }
 0x22a   : > { %v2532_v27 = vrot.slane %v2531_v30, 4  ;;  %v2680_v37 = vadd.f32 %v2679_v49, %v2617_v53  ;;  %v2637_v3 = vmul.f32 %v5386_v39, %v5386_v39  ;;  %v2702_v41 = vadd.f32 %v2701_v34, %v2700_v32  ;;  %p3718_p12 = pnand %p3717_p11, %p3711_p8 }
 0x22b   : > { %v2567_v26 = vadd.f32 %v2566_v17, %v2565_v42  ;;  %v2660_v51 = vadd.f32 %v2659_v20, %v2619_v45  ;;  %v2705_v0 = vsel %vm2538_vm2, %v2621_v54, 0.0  ;;  %v2512_v17 = vadd.f32 %v2511_v60, %v2510_v29 }
 0x22c   : > { %v2533_v16 = vadd.f32 %v2532_v27, %v2531_v30  ;;  %v2681_v55 = vadd.f32 %v2680_v37, %v2620_v52  ;;  %v2638_v25 = vmul.f32 %v5387_v14, %v5387_v14  ;;  %v2704_v40 = vadd.f32 %v2703_v11, %v2702_v41 }
 0x22d   : > { %v2569_v15 = vadd.f32 %v2568_v13, %v2567_v26  ;;  %v2661_v63 = vadd.f32 %v2660_v51, %v2622_v5  ;;  %v2707_v4 = vsel %vm2538_vm2, %v2624_v35, 0.0  ;;  %v2513_v13 = vrot.slane %v2512_v17, 2 }
 0x22e   : > { %v2534_v53 = vrot.slane %v2533_v16, 2  ;;  %v2682_v36 = vadd.f32 %v2681_v55, %v2623_v59  ;;  %v2639_v39 = vmul.f32 %v4935_v23, %v4935_v23  ;;  %v2706_v54 = vadd.f32 %v2705_v0, %v2704_v40 }
 0x22f   : > { %v2570_v47 = vrot.slane %v2569_v15, 4  ;;  %v2662_v45 = vadd.f32 %v2661_v63, %v2625_v18  ;;  %v2709_v29 = vsel %vm2538_vm2, %v2627_v56, 0.0  ;;  %v2514_v30 = vadd.f32 %v2513_v13, %v2512_v17 }
 0x230   : > { %v2535_v52 = vadd.f32 %v2534_v53, %v2533_v16  ;;  %v2683_v49 = vadd.f32 %v2682_v36, %v2626_v43  ;;  %v2640_v14 = vmul.f32 %v5388_v12, %v5388_v12  ;;  %v2708_v35 = vadd.f32 %v2707_v4, %v2706_v54 }
 0x231   : > { %v2571_v42 = vadd.f32 %v2570_v47, %v2569_v15  ;;  %v2663_v5 = vadd.f32 %v2662_v45, %v2628_v21  ;;  %v2711_v20 = vsel %vm2538_vm2, %v2630_v22, 0.0  ;;  %v2515_v32 = vrot.slane %v2514_v30, 1  ;;  %v5405_v22 = vld [vmem:[#allocation43_spill] sm:$0xff]  ;;  %v5406_v45 = vld [vmem:[#allocation42_spill] sm:$0xff] }
 0x232   : > { %v2536_v59 = vrot.slane %v2535_v52, 1  ;;  %v2684_v11 = vadd.f32 %v2683_v49, %v2629_v1  ;;  %v2641_v23 = vmul.f32 %v5389_v9, %v5389_v9  ;;  %v2710_v56 = vadd.f32 %v2709_v29, %v2708_v35  ;;  %v5407_v49 = vld [vmem:[#allocation41_spill] sm:$0xff] }
 0x233   : > { %v2572_v26 = vrot.slane %v2571_v42, 2  ;;  %v2664_v18 = vadd.f32 %v2663_v5, %v2631_v57  ;;  %v2713_v60 = vsel %vm2538_vm2, %v2633_v31, 0.0  ;;  %v2516_v27 = vadd.f32 %v2515_v32, %v2514_v30 }
 0x234   : > { %v2537_v43 = vadd.f32 %v2536_v59, %v2535_v52  ;;  %v2685_v37 = vadd.f32 %v2684_v11, %v2632_v10  ;;  %v5402_v12 = vlaneseq  ;;  %v2642_v51 = vmul.f32 %v5405_v22, %v5405_v22  ;;  %v5408_v59 = vld [vmem:[#allocation44_spill] sm:$0xff] }
 0x235   : > { %v2573_v34 = vadd.f32 %v2572_v26, %v2571_v42  ;;  %v2643_v1 = vmul.f32 %v5390_v38, %v5390_v38  ;;  %v2665_v9 = vadd.f32 %v2664_v18, %v2634_v7  ;;  %v2712_v57 = vadd.f32 %v2711_v20, %v2710_v56  ;;  %v2495_v42 = vld [vmem:[#allocation2] sm:$0x7] }
 0x236   : > { %vm5202_vm3 = vcmp.lt.s32.totalorder %v5402_v12, 300  ;;  %v2579_v0 = vcombine.low %v2516_v27, %v2537_v43  ;;  %v2686_v31 = vadd.f32 %v2685_v37, %v2635_v19  ;;  %v2715_v17 = vsel %vm2538_vm2, %v2636_v8, 0.0 }
 0x237   : > { %v2574_v15 = vrot.slane %v2573_v34, 1  ;;  %v2644_v10 = vmul.f32 %v5391_v46, %v5391_v46  ;;  %v2645_v16 = vmul.f32 %v4927_v2, %v4927_v2  ;;  %v2666_v47 = vadd.f32 %v2665_v9, %v2637_v3 }
 0x238   : > { %v2714_v55 = vadd.f32 %v2713_v60, %v2712_v57  ;;  %v2586_v63 = vrot.slane %v2579_v0, %v5127_v44  ;;  %v2687_v38 = vadd.f32 %v2686_v31, %v2638_v25  ;;  %v2717_v7 = vsel %vm2538_vm2, %v2639_v39, 0.0 }
 0x239   : > { %v2575_v41 = vadd.f32 %v2574_v15, %v2573_v34  ;;  %v2646_v19 = vmul.f32 %v5392_v24, %v5392_v24  ;;  %v2647_v8 = vmul.f32 %v5393_v6, %v5393_v6  ;;  %v2667_v4 = vadd.f32 %v2666_v47, %v2640_v14 }
 0x23a   : > { %v2716_v46 = vadd.f32 %v2715_v17, %v2714_v55  ;;  %v2648_v2 = vmul.f32 %v4940_v50, %v4940_v50  ;;  %v2688_v3 = vadd.f32 %v2687_v38, %v2641_v23  ;;  %v2719_v53 = vsel %vm2538_vm2, %v2642_v51, 0.0 }
 0x23b   : > { %v2593_v40 = vrot.slane %v2575_v41, %v5127_v44  ;;  %v2649_v25 = vmul.f32 %v5394_v28, %v5394_v28  ;;  %v2650_v24 = vmul.f32 %v5395_v61, %v5395_v61  ;;  %v2668_v36 = vadd.f32 %v2667_v4, %v2643_v1 }
 0x23c   : > { %v2718_v39 = vadd.f32 %v2717_v7, %v2716_v46  ;;  %v2651_v50 = vmul.f32 %v5406_v45, %v5406_v45  ;;  %v2689_v54 = vadd.f32 %v2688_v3, %v2644_v10  ;;  %v2721_v29 = vsel %vm2538_vm2, %v2645_v16, 0.0 }
 0x23d   : > { %v2594_v13 = vcombine.low %v2586_v63, %v2593_v40  ;;  %v2652_v30 = vmul.f32 %v5396_v33, %v5396_v33  ;;  %v2653_v28 = vmul.f32 %v5397_v62, %v5397_v62  ;;  %v2669_v52 = vadd.f32 %v2668_v36, %v2646_v19 }
 0x23e   : > { %v2720_v61 = vadd.f32 %v2719_v53, %v2718_v39  ;;  %v2654_v14 = vmul.f32 %v5407_v49, %v5407_v49  ;;  %v2690_v5 = vadd.f32 %v2689_v54, %v2647_v8  ;;  %v2723_v35 = vsel %vm2538_vm2, %v2648_v2, 0.0 }
 0x23f   : > { %v2601_v6 = vrot.slane %v2594_v13, %v5127_v44  ;;  %v2655_v20 = vmul.f32 %v5398_v58, %v5398_v58  ;;  %v2670_v32 = vadd.f32 %v2669_v52, %v2649_v25  ;;  %v2656_v62 = vmul.f32 %v5401_v48, %v5401_v48 }
 0x240   : > { %v2722_v33 = vadd.f32 %v2721_v29, %v2720_v61  ;;  %v2657_v34 = vmul.f32 %v5408_v59, %v5408_v59  ;;  %v2691_v11 = vadd.f32 %v2690_v5, %v2650_v24  ;;  %v2725_v23 = vsel %vm2538_vm2, %v2651_v50, 0.0 }
 0x241   : > { %v2603_v26 = vadd.f32 %v2601_v6, %v2495_v42  ;;  %v2671_v18 = vadd.f32 %v2670_v32, %v2652_v30 }
 0x242   : > { %v2724_v56 = vadd.f32 %v2723_v35, %v2722_v33 }
 0x243   : > { %2608 = vst.msk [vmem:[#allocation2] sm:$0x7] %vm5202_vm3, %v2603_v26 }
 0x244   : > { %3721 = shalt.err (!%p3718_p12)
}
 0x245   : > { %3407 = dma.vmem_to_hbm [thread:$0]  (%p3414_p5), %s2832_s27, 48, %s5286_s4, [#allocation3]   ;;  %v2692_v58 = vadd.f32 %v2691_v11, %v2653_v28  ;;  %v2727_v48 = vsel %vm2538_vm2, %v2654_v14, 0.0  ;;  %v2672_v60 = vadd.f32 %v2671_v18, %v2655_v20  ;;  %v2726_v27 = vadd.f32 %v2725_v23, %v2724_v56  ;;  %v2609_v2 = vld [vmem:[#allocation4] sm:$0x7] }
 0x246   : > { %v2729_v15 = vsel %vm2538_vm2, %v2657_v34, 0.0  ;;  %s3776_s8 = smov [#allocation4]  }
 0x247   : > { %v2693_v43 = vadd.f32 %v2692_v58, %v2656_v62  ;;  %v2673_v37 = vrot.slane %v2672_v60, 4  ;;  %v2728_v12 = vadd.f32 %v2727_v48, %v2726_v27  ;;  %s2842_s9 = sshll.u32 %s3776_s8, 4  ;;  %s2843_s9 = int_to_ptr.vmem [resolvable:$true] %s2842_s9 }
 0x248   : > { %s3732_s10 = scalar_lea.vmem %s2843_s9, 48  ;;  %s3738_s11 = scalar_lea.vmem %s2843_s9, 64 }
 0x249   : > { %v2694_v22 = vrot.slane %v2693_v43, 4  ;;  %v2674_v51 = vadd.f32 %v2673_v37, %v2672_v60  ;;  %v2730_v1 = vadd.f32 %v2729_v15, %v2728_v12  ;;  %p3733_p13 = scmp.ne.s32.totalorder %s2843_s9, %s3732_s10  ;;  %p3739_p2 = scmp.lt.s32.totalorder %s2843_s9, %s2843_s9 }
 0x24a   : > { %p3740_p3 = scmp.lt.s32.totalorder %s3738_s11, %s3732_s10 }
 0x24b   : > { %v2695_v9 = vadd.f32 %v2694_v22, %v2693_v43  ;;  %v2675_v57 = vrot.slane %v2674_v51, 2  ;;  %v2731_v41 = vrot.slane %v2730_v1, 4  ;;  %p3734_p0 = pnand %p3733_p13, %p3414_p5 }
 0x24c   : > { %p3741_p4 = por %p3740_p3, %p3739_p2 }
 0x24d   : > { %v2696_v0 = vrot.slane %v2695_v9, 2  ;;  %v2676_v31 = vadd.f32 %v2675_v57, %v2674_v51  ;;  %v2732_v17 = vadd.f32 %v2731_v41, %v2730_v1  ;;  %p3735_p1 = pneg %p3734_p0 }
 0x24f   : > { %v2697_v10 = vadd.f32 %v2696_v0, %v2695_v9  ;;  %v2677_v16 = vrot.slane %v2676_v31, 1  ;;  %v2733_v47 = vrot.slane %v2732_v17, 2  ;;  %p3742_p6 = pnand %p3741_p4, %p3735_p1 }
 0x251   : > { %v2698_v55 = vrot.slane %v2697_v10, 1  ;;  %v2678_v63 = vadd.f32 %v2677_v16, %v2676_v31  ;;  %v2734_v40 = vadd.f32 %v2733_v47, %v2732_v17 }
 0x253   : > { %v2699_v38 = vadd.f32 %v2698_v55, %v2697_v10  ;;  %v2735_v7 = vrot.slane %v2734_v40, 1 }
 0x255   : > { %v2740_v19 = vcombine.low %v2678_v63, %v2699_v38  ;;  %v2736_v8 = vadd.f32 %v2735_v7, %v2734_v40 }
 0x257   : > { %v2747_v4 = vrot.slane %v2740_v19, %v5127_v44  ;;  %v2754_v46 = vrot.slane %v2736_v8, %v5127_v44 }
 0x259   : > { %v2755_v13 = vcombine.low %v2747_v4, %v2754_v46 }
 0x25b   : > { %v2762_v3 = vrot.slane %v2755_v13, %v5127_v44 }
 0x25d   : > { %v2764_v53 = vadd.f32 %v2762_v3, %v2609_v2 }
 0x25f   : > { %2765 = vst.msk [vmem:[#allocation4] sm:$0x7] %vm5202_vm3, %v2764_v53 }
 0x260   : > { %3745 = shalt.err (!%p3742_p6)
}
 0x261   : > { %3409 = dma.vmem_to_hbm [thread:$0]  (%p3414_p5), %s2843_s9, 48, %s5287_s5, [#allocation5]  }
 0x262   : > { %3761 = dma.done.wait (%p3414_p5), [#allocation3], 48  }
 0x263   : > { %3763 = vsyncadd (%p3414_p5), [#allocation3], 4294967248 }
 0x264   : > { %3765 = dma.done.wait (%p3414_p5), [#allocation5], 48  }
 0x265   : > { %3767 = vsyncadd (%p3414_p5), [#allocation5], 4294967248 }
 0x266 PF: > { %s18_s18 = sadd.s32 1, %s3770_s18  }
 0x267   : > { %p15_p7 = scmp.ge.s32.totalorder %s18_s18, 4  }
 0x269   :  { %17 = sbr.rel (!%p15_p7) target bundleno = 2 (0x2), region = 83 }
 0x26e   :  { %2868 = vsyncpa [#allocation3], 1 }
 0x26f   :  { %2870 = vsyncpa [#allocation3 + $0x1], 1 }
 0x270   :  { %2871 = vsyncpa [#allocation5], 1 }

</bundles_post_ra>
